<compile_context>
chip_gen: v5e
topology: v5e:2x2
jax: 0.10.0
libtpu: 0.0.40
codegen_flags: <defaults>
</compile_context>

<pallas_src>
import functools
import numpy as np

import jax
import jax.numpy as jnp
from jax import lax
from jax.experimental import pallas as pl
from jax.experimental.pallas import tpu as pltpu

# ----------------------------- config -------------------------------------
VOCAB = 64
VOCAB_PAD = 128                # lane-dense lm_head output (sliced back to VOCAB)
D_MODEL = 32
N_HEADS = 4
D_KV = 8
INNER = N_HEADS * D_KV         # 32
D_FF = 64
N_LAYERS = 2                   # encoder layers == decoder layers
REL_BUCKETS = 8
REL_MAX_DIST = 32
EPS = 1e-6
NEG = -1e9
_GELU_C = float(np.sqrt(2.0 / np.pi))


# --------------------------- Pallas kernels --------------------------------
def _rms(x, w):
    var = jnp.mean(x * x, axis=-1, keepdims=True)
    return x * jax.lax.rsqrt(var + EPS) * w


def _softmax_lastdim(s):
    m = jnp.max(s, axis=-1, keepdims=True)
    p = jnp.exp(s - m)
    return p * pl.reciprocal(jnp.sum(p, axis=-1, keepdims=True), approx=True)


def _self_attn_block_kernel(x_ref, lnw_ref, wqkv_ref, wo_ref, rel_ref, mask_ref, o_ref):
    # per batch: o = x + O( softmax(Q K^T + rel + mask) V ),  Q/K/V from rmsnorm(x)
    x = x_ref[0]                                         # (Lq, D)
    h = _rms(x, lnw_ref[...])                            # (Lq, D)
    qkv = jnp.dot(h, wqkv_ref[...], preferred_element_type=jnp.float32)   # (Lq, 3*INNER)
    mask = mask_ref[0]                                   # (Lq, Lk) or (1, Lk)
    ctx_heads = []
    for hh in range(N_HEADS):
        qh = qkv[:, hh * D_KV:(hh + 1) * D_KV]
        kh = qkv[:, INNER + hh * D_KV: INNER + (hh + 1) * D_KV]
        vh = qkv[:, 2 * INNER + hh * D_KV: 2 * INNER + (hh + 1) * D_KV]
        # T5: no 1/sqrt(d_kv) scaling; contract last axes (no explicit transpose)
        s = lax.dot_general(qh, kh, (((1,), (1,)), ((), ())),
                            preferred_element_type=jnp.float32)           # (Lq, Lk)
        s = s + rel_ref[hh] + mask
        p = _softmax_lastdim(s)
        ctx_heads.append(jnp.dot(p, vh, preferred_element_type=jnp.float32))
    ctx = jnp.concatenate(ctx_heads, axis=-1)            # (Lq, INNER)
    out = jnp.dot(ctx, wo_ref[...], preferred_element_type=jnp.float32)   # (Lq, D)
    o_ref[0] = x + out


def _cross_attn_block_kernel(x_ref, kv_ref, lnw_ref, wq_ref, wkv_ref, wo_ref,
                             mask_ref, o_ref):
    # per batch: o = x + O( softmax(Q K^T + mask) V ), Q from rmsnorm(x), K/V from enc_out
    x = x_ref[0]                                         # (Lq, D)
    kv_in = kv_ref[0]                                    # (Lk, D) (already final-LN'd)
    h = _rms(x, lnw_ref[...])
    q = jnp.dot(h, wq_ref[...], preferred_element_type=jnp.float32)       # (Lq, INNER)
    kv = jnp.dot(kv_in, wkv_ref[...], preferred_element_type=jnp.float32) # (Lk, 2*INNER)
    mask = mask_ref[0]                                   # (1, Lk)
    ctx_heads = []
    for hh in range(N_HEADS):
        qh = q[:, hh * D_KV:(hh + 1) * D_KV]
        kh = kv[:, hh * D_KV:(hh + 1) * D_KV]
        vh = kv[:, INNER + hh * D_KV: INNER + (hh + 1) * D_KV]
        s = lax.dot_general(qh, kh, (((1,), (1,)), ((), ())),
                            preferred_element_type=jnp.float32)           # (Lq, Lk)
        s = s + mask                                     # T5 cross-attn: no rel bias
        p = _softmax_lastdim(s)
        ctx_heads.append(jnp.dot(p, vh, preferred_element_type=jnp.float32))
    ctx = jnp.concatenate(ctx_heads, axis=-1)
    out = jnp.dot(ctx, wo_ref[...], preferred_element_type=jnp.float32)
    o_ref[0] = x + out


def _ffn_block_kernel(x_ref, lnw_ref, wi_ref, wo_ref, o_ref):
    # per batch: o = x + wo @ ( NewGELU(x_n @ wi0) * (x_n @ wi1) ), x_n = rmsnorm(x)
    x = x_ref[0]                                         # (L, D)
    h = _rms(x, lnw_ref[...])
    ab = jnp.dot(h, wi_ref[...], preferred_element_type=jnp.float32)      # (L, 2*D_FF)
    a = ab[:, :D_FF]
    b = ab[:, D_FF:]
    g = 0.5 * a * (1.0 + jnp.tanh(_GELU_C * (a + 0.044715 * a * a * a)))  # NewGELU
    out = jnp.dot(g * b, wo_ref[...], preferred_element_type=jnp.float32)  # (L, D)
    o_ref[0] = x + out


def _rmsnorm3d_kernel(x_ref, w_ref, o_ref):
    o_ref[0] = _rms(x_ref[0], w_ref[...])


def _final_head_kernel(x_ref, lnw_ref, w_ref, o_ref):
    # decoder final rmsnorm + untied lm_head (output padded to 128 lanes)
    h = _rms(x_ref[0], lnw_ref[...])
    o_ref[0] = jnp.dot(h, w_ref[...], preferred_element_type=jnp.float32)


# ----------------------------- wrappers ------------------------------------
_PARALLEL_B = pltpu.CompilerParams(dimension_semantics=("parallel",))


def fused_self_attn_block(x, ln_w, wqkv, wo, rel, mask):
    B, L, D = x.shape
    return pl.pallas_call(
        _self_attn_block_kernel,
        out_shape=jax.ShapeDtypeStruct((B, L, D), jnp.float32),
        grid=(B,),
        in_specs=[
            pl.BlockSpec((1, L, D), lambda b: (b, 0, 0)),
            pl.BlockSpec((1, D), lambda b: (0, 0)),
            pl.BlockSpec(wqkv.shape, lambda b: (0, 0)),
            pl.BlockSpec(wo.shape, lambda b: (0, 0)),
            pl.BlockSpec(rel.shape, lambda b: (0, 0, 0)),
            pl.BlockSpec((1,) + mask.shape[1:], lambda b: (b, 0, 0)),
        ],
        out_specs=pl.BlockSpec((1, L, D), lambda b: (b, 0, 0)),
        compiler_params=_PARALLEL_B,
    )(x, ln_w.reshape(1, D), wqkv, wo, rel, mask)


def fused_cross_attn_block(x, enc_out, ln_w, wq, wkv, wo, mask):
    B, Lq, D = x.shape
    Lk = enc_out.shape[1]
    return pl.pallas_call(
        _cross_attn_block_kernel,
        out_shape=jax.ShapeDtypeStruct((B, Lq, D), jnp.float32),
        grid=(B,),
        in_specs=[
            pl.BlockSpec((1, Lq, D), lambda b: (b, 0, 0)),
            pl.BlockSpec((1, Lk, D), lambda b: (b, 0, 0)),
            pl.BlockSpec((1, D), lambda b: (0, 0)),
            pl.BlockSpec(wq.shape, lambda b: (0, 0)),
            pl.BlockSpec(wkv.shape, lambda b: (0, 0)),
            pl.BlockSpec(wo.shape, lambda b: (0, 0)),
            pl.BlockSpec((1,) + mask.shape[1:], lambda b: (b, 0, 0)),
        ],
        out_specs=pl.BlockSpec((1, Lq, D), lambda b: (b, 0, 0)),
        compiler_params=_PARALLEL_B,
    )(x, enc_out, ln_w.reshape(1, D), wq, wkv, wo, mask)


def fused_ffn_block(x, ln_w, wi, wo):
    B, L, D = x.shape
    return pl.pallas_call(
        _ffn_block_kernel,
        out_shape=jax.ShapeDtypeStruct((B, L, D), jnp.float32),
        grid=(B,),
        in_specs=[
            pl.BlockSpec((1, L, D), lambda b: (b, 0, 0)),
            pl.BlockSpec((1, D), lambda b: (0, 0)),
            pl.BlockSpec(wi.shape, lambda b: (0, 0)),
            pl.BlockSpec(wo.shape, lambda b: (0, 0)),
        ],
        out_specs=pl.BlockSpec((1, L, D), lambda b: (b, 0, 0)),
        compiler_params=_PARALLEL_B,
    )(x, ln_w.reshape(1, D), wi, wo)


def pallas_rmsnorm3d(x, w):
    B, L, D = x.shape
    return pl.pallas_call(
        _rmsnorm3d_kernel,
        out_shape=jax.ShapeDtypeStruct((B, L, D), jnp.float32),
        grid=(B,),
        in_specs=[
            pl.BlockSpec((1, L, D), lambda b: (b, 0, 0)),
            pl.BlockSpec((1, D), lambda b: (0, 0)),
        ],
        out_specs=pl.BlockSpec((1, L, D), lambda b: (b, 0, 0)),
        compiler_params=_PARALLEL_B,
    )(x, w.reshape(1, D))


def fused_final_head(x, ln_w, w_pad):
    B, L, D = x.shape
    V = w_pad.shape[1]
    return pl.pallas_call(
        _final_head_kernel,
        out_shape=jax.ShapeDtypeStruct((B, L, V), jnp.float32),
        grid=(B,),
        in_specs=[
            pl.BlockSpec((1, L, D), lambda b: (b, 0, 0)),
            pl.BlockSpec((1, D), lambda b: (0, 0)),
            pl.BlockSpec(w_pad.shape, lambda b: (0, 0)),
        ],
        out_specs=pl.BlockSpec((1, L, V), lambda b: (b, 0, 0)),
        compiler_params=_PARALLEL_B,
    )(x, ln_w.reshape(1, D), w_pad)


# --------------------------- model glue (plain JAX) ------------------------
def _relative_position_bucket(relative_position, bidirectional, num_buckets, max_distance):
    relative_buckets = jnp.zeros_like(relative_position)
    if bidirectional:
        num_buckets //= 2
        relative_buckets = relative_buckets + (relative_position > 0).astype(jnp.int32) * num_buckets
        relative_position = jnp.abs(relative_position)
    else:
        relative_position = -jnp.minimum(relative_position, 0)
    max_exact = num_buckets // 2
    is_small = relative_position < max_exact
    rp = jnp.maximum(relative_position, 1).astype(jnp.float32)
    rel_if_large = max_exact + (
        jnp.log(rp / max_exact) / np.log(max_distance / max_exact) * (num_buckets - max_exact)
    ).astype(jnp.int32)
    rel_if_large = jnp.minimum(rel_if_large, num_buckets - 1)
    return relative_buckets + jnp.where(is_small, relative_position, rel_if_large)


def compute_rel_bias(q_len, k_len, table, bidirectional):
    ctx = jnp.arange(q_len, dtype=jnp.int32)[:, None]
    mem = jnp.arange(k_len, dtype=jnp.int32)[None, :]
    rel = mem - ctx
    buckets = _relative_position_bucket(rel, bidirectional, REL_BUCKETS, REL_MAX_DIST)
    values = jnp.take(table, buckets, axis=0)          # (q, k, H)
    return jnp.transpose(values, (2, 0, 1))            # (H, q, k)


def mt5_forward(params, input_ids, attention_mask=None, decoder_input_ids=None,
                decoder_attention_mask=None, labels=None):
    B, Le = input_ids.shape
    Ld = decoder_input_ids.shape[1]
    if attention_mask is None:
        attention_mask = jnp.ones((B, Le), dtype=jnp.float32)
    if decoder_attention_mask is None:
        decoder_attention_mask = jnp.ones((B, Ld), dtype=jnp.float32)
    attention_mask = attention_mask.astype(jnp.float32)
    decoder_attention_mask = decoder_attention_mask.astype(jnp.float32)

    # small additive masks (per batch, NOT replicated over heads)
    enc_mask_add = ((1.0 - attention_mask) * NEG)[:, None, :]             # (B, 1, Le)
    causal = jnp.tril(jnp.ones((Ld, Ld), dtype=jnp.float32))
    dec_self = causal[None, :, :] * decoder_attention_mask[:, None, :]    # (B, Ld, Ld)
    dec_mask_add = (1.0 - dec_self) * NEG                                 # (B, Ld, Ld)
    cross_mask_add = enc_mask_add                                         # (B, 1, Le)

    enc_rel = compute_rel_bias(Le, Le, params['enc_rel_bias'], bidirectional=True)   # (H,Le,Le)
    dec_rel = compute_rel_bias(Ld, Ld, params['dec_rel_bias'], bidirectional=False)  # (H,Ld,Ld)

    # ---------------- encoder ----------------
    x = jnp.take(params['shared'], input_ids, axis=0)                     # (B, Le, D)
    for lyr in params['enc_layers']:
        x = fused_self_attn_block(x, lyr['ln0'], lyr['wqkv'], lyr['wo_attn'],
                                  enc_rel, enc_mask_add)
        x = fused_ffn_block(x, lyr['ln1'], lyr['wi'], lyr['wo_ffn'])
    enc_out = pallas_rmsnorm3d(x, params['enc_final_ln'])

    # ---------------- decoder ----------------
    y = jnp.take(params['shared'], decoder_input_ids, axis=0)             # (B, Ld, D)
    for lyr in params['dec_layers']:
        y = fused_self_attn_block(y, lyr['ln0'], lyr['self_wqkv'], lyr['self_wo'],
                                  dec_rel, dec_mask_add)
        y = fused_cross_attn_block(y, enc_out, lyr['ln1'], lyr['cross_wq'],
                                   lyr['cross_wkv'], lyr['cross_wo'], cross_mask_add)
        y = fused_ffn_block(y, lyr['ln2'], lyr['wi'], lyr['wo_ffn'])

    # decoder final LN + untied lm_head fused; mT5: no d_model**-0.5 scaling
    logits = fused_final_head(y, params['dec_final_ln'], params['lm_head'])[:, :, :VOCAB]

    if labels is not None:
        # TODO(synk): cross-entropy reduction kept in plain-JAX glue (tiny vs matmuls).
        logp = jax.nn.log_softmax(logits, axis=-1)
        valid = (labels != -100)
        safe = jnp.where(valid, labels, 0)
        nll = -jnp.take_along_axis(logp, safe[..., None], axis=-1)[..., 0]
        loss = jnp.sum(nll * valid) / jnp.maximum(jnp.sum(valid), 1)
        return loss, logits
    return logits


# --------------------------- deterministic init -----------------------------
def init_params(key):
    def nrm(k, shape, scale=0.02):
        return scale * jax.random.normal(k, shape, dtype=jnp.float32)

    keys = iter(jax.random.split(key, 256))
    params = {
        'shared': nrm(next(keys), (VOCAB, D_MODEL), scale=1.0),
        # untied lm_head, padded to 128 lanes (zero cols beyond VOCAB; sliced after kernel)
        'lm_head': jnp.pad(nrm(next(keys), (D_MODEL, VOCAB)),
                           ((0, 0), (0, VOCAB_PAD - VOCAB))),
        'enc_rel_bias': nrm(next(keys), (REL_BUCKETS, N_HEADS)),
        'dec_rel_bias': nrm(next(keys), (REL_BUCKETS, N_HEADS)),
        'enc_final_ln': jnp.ones((D_MODEL,), jnp.float32),
        'dec_final_ln': jnp.ones((D_MODEL,), jnp.float32),
        'enc_layers': [],
        'dec_layers': [],
    }
    for _ in range(N_LAYERS):
        params['enc_layers'].append({
            'ln0': jnp.ones((D_MODEL,), jnp.float32),
            'wqkv': nrm(next(keys), (D_MODEL, 3 * INNER)),       # Wq|Wk|Wv concatenated
            'wo_attn': nrm(next(keys), (INNER, D_MODEL)),
            'ln1': jnp.ones((D_MODEL,), jnp.float32),
            'wi': nrm(next(keys), (D_MODEL, 2 * D_FF)),          # wi_0|wi_1 concatenated
            'wo_ffn': nrm(next(keys), (D_FF, D_MODEL)),
        })
    for _ in range(N_LAYERS):
        params['dec_layers'].append({
            'ln0': jnp.ones((D_MODEL,), jnp.float32),
            'self_wqkv': nrm(next(keys), (D_MODEL, 3 * INNER)),
            'self_wo': nrm(next(keys), (INNER, D_MODEL)),
            'ln1': jnp.ones((D_MODEL,), jnp.float32),
            'cross_wq': nrm(next(keys), (D_MODEL, INNER)),
            'cross_wkv': nrm(next(keys), (D_MODEL, 2 * INNER)),  # Wk|Wv concatenated
            'cross_wo': nrm(next(keys), (INNER, D_MODEL)),
            'ln2': jnp.ones((D_MODEL,), jnp.float32),
            'wi': nrm(next(keys), (D_MODEL, 2 * D_FF)),
            'wo_ffn': nrm(next(keys), (D_FF, D_MODEL)),
        })
    return params


# ----------------------------------- main ----------------------------------
if __name__ == "__main__":
    key = jax.random.PRNGKey(0)
    k_par, k_in, k_dec = jax.random.split(key, 3)

    B, Le, Ld = 2, 8, 8
    params = init_params(k_par)

    input_ids = jax.random.randint(k_in, (B, Le), 0, VOCAB, dtype=jnp.int32)
    decoder_input_ids = jax.random.randint(k_dec, (B, Ld), 0, VOCAB, dtype=jnp.int32)
    attention_mask = jnp.ones((B, Le), dtype=jnp.float32).at[:, -1].set(0.0)  # pad last pos
    decoder_attention_mask = jnp.ones((B, Ld), dtype=jnp.float32)
    labels = decoder_input_ids  # exercise the loss path

    fwd = jax.jit(mt5_forward)
    loss, logits = fwd(params, input_ids,
                       attention_mask=attention_mask,
                       decoder_input_ids=decoder_input_ids,
                       decoder_attention_mask=decoder_attention_mask,
                       labels=labels)
    jax.block_until_ready((loss, logits))
    assert logits.shape == (B, Ld, VOCAB)
    assert np.isfinite(np.asarray(loss)) and np.all(np.isfinite(np.asarray(logits)))
    print("KERNEL_OK")
</pallas_src>

<mosaic_0001>
module attributes {stable_mosaic.version = 11 : i64} {
  func.func @_self_attn_block_kernel(%arg0: i32, %arg1: memref<1x8x32xf32, #tpu.memory_space<vmem>>, %arg2: memref<1x32xf32, #tpu.memory_space<vmem>>, %arg3: memref<32x96xf32, #tpu.memory_space<vmem>>, %arg4: memref<32x32xf32, #tpu.memory_space<vmem>>, %arg5: memref<4x8x8xf32, #tpu.memory_space<vmem>>, %arg6: memref<1x1x8xf32, #tpu.memory_space<vmem>>, %arg7: memref<1x8x32xf32, #tpu.memory_space<vmem>>) attributes {dimension_semantics = [#tpu.dimension_semantics<parallel>], iteration_bounds = array<i64: 2>, scalar_prefetch = 0 : i64, scratch_operands = 0 : i64, tpu.core_type = #tpu.core_type<tc>, window_params = [{transform_indices = @transform_0, window_bounds = array<i64: 1, 8, 32>}, {pipeline_mode = #tpu.pipeline_mode<synchronous>, transform_indices = @transform_1, window_bounds = array<i64: 1, 32>}, {pipeline_mode = #tpu.pipeline_mode<synchronous>, transform_indices = @transform_2, window_bounds = array<i64: 32, 96>}, {pipeline_mode = #tpu.pipeline_mode<synchronous>, transform_indices = @transform_3, window_bounds = array<i64: 32, 32>}, {pipeline_mode = #tpu.pipeline_mode<synchronous>, transform_indices = @transform_4, window_bounds = array<i64: 4, 8, 8>}, {transform_indices = @transform_5, window_bounds = array<i64: 1, 1, 8>}, {transform_indices = @transform_6, window_bounds = array<i64: 1, 8, 32>}]} {
    %c0 = arith.constant 0 : index
    %c0_0 = arith.constant 0 : index
    %c0_1 = arith.constant 0 : index
    %0 = vector.load %arg1[%c0, %c0_0, %c0_1] : memref<1x8x32xf32, #tpu.memory_space<vmem>>, vector<1x8x32xf32>
    %1 = vector.shape_cast %0 : vector<1x8x32xf32> to vector<8x32xf32>
    %c0_2 = arith.constant 0 : index
    %c0_3 = arith.constant 0 : index
    %2 = vector.load %arg2[%c0_2, %c0_3] : memref<1x32xf32, #tpu.memory_space<vmem>>, vector<1x32xf32>
    %3 = arith.mulf %1, %1 : vector<8x32xf32>
    %cst = arith.constant dense<0.000000e+00> : vector<8xf32>
    %4 = vector.multi_reduction <add>, %3, %cst [1] : vector<8x32xf32> to vector<8xf32>
    %5 = vector.shape_cast %4 : vector<8xf32> to vector<8x1xf32>
    %cst_4 = arith.constant 3.200000e+01 : f32
    %6 = vector.broadcast %cst_4 : f32 to vector<8x1xf32>
    %7 = arith.divf %5, %6 : vector<8x1xf32>
    %cst_5 = arith.constant 9.99999997E-7 : f32
    %8 = vector.broadcast %cst_5 : f32 to vector<8x1xf32>
    %9 = arith.addf %7, %8 : vector<8x1xf32>
    %10 = math.rsqrt %9 : vector<8x1xf32>
    %11 = vector.broadcast %10 : vector<8x1xf32> to vector<8x32xf32>
    %12 = arith.mulf %1, %11 : vector<8x32xf32>
    %13 = vector.broadcast %2 : vector<1x32xf32> to vector<8x32xf32>
    %14 = arith.mulf %12, %13 : vector<8x32xf32>
    %c0_6 = arith.constant 0 : index
    %c0_7 = arith.constant 0 : index
    %15 = vector.load %arg3[%c0_6, %c0_7] : memref<32x96xf32, #tpu.memory_space<vmem>>, vector<32x96xf32>
    %cst_8 = arith.constant dense<0.000000e+00> : vector<8x96xf32>
    %16 = tpu.matmul %14, %15, %cst_8 {dimension_numbers = #tpu.dot_dimension_numbers<[1], [0], [0], [1], [0, 0, 1, 1], [], []>} : vector<8x32xf32>, vector<32x96xf32>, vector<8x96xf32> -> vector<8x96xf32>
    %c0_9 = arith.constant 0 : index
    %c0_10 = arith.constant 0 : index
    %c0_11 = arith.constant 0 : index
    %17 = vector.load %arg6[%c0_9, %c0_10, %c0_11] : memref<1x1x8xf32, #tpu.memory_space<vmem>>, vector<1x1x8xf32>
    %18 = vector.shape_cast %17 : vector<1x1x8xf32> to vector<1x8xf32>
    %19 = vector.extract_strided_slice %16 {offsets = [0, 0], sizes = [8, 8], strides = [1, 1]} : vector<8x96xf32> to vector<8x8xf32>
    %20 = vector.extract_strided_slice %16 {offsets = [0, 32], sizes = [8, 8], strides = [1, 1]} : vector<8x96xf32> to vector<8x8xf32>
    %21 = vector.extract_strided_slice %16 {offsets = [0, 64], sizes = [8, 8], strides = [1, 1]} : vector<8x96xf32> to vector<8x8xf32>
    %cst_12 = arith.constant dense<0.000000e+00> : vector<8x8xf32>
    %22 = tpu.matmul %19, %20, %cst_12 {dimension_numbers = #tpu.dot_dimension_numbers<[1], [1], [0], [0], [0, 0, 1, 0], [], []>} : vector<8x8xf32>, vector<8x8xf32>, vector<8x8xf32> -> vector<8x8xf32>
    %c0_13 = arith.constant 0 : index
    %c0_14 = arith.constant 0 : index
    %c0_15 = arith.constant 0 : index
    %23 = vector.load %arg5[%c0_13, %c0_14, %c0_15] : memref<4x8x8xf32, #tpu.memory_space<vmem>>, vector<1x8x8xf32>
    %24 = vector.shape_cast %23 : vector<1x8x8xf32> to vector<8x8xf32>
    %25 = arith.addf %22, %24 : vector<8x8xf32>
    %26 = vector.broadcast %18 : vector<1x8xf32> to vector<8x8xf32>
    %27 = arith.addf %25, %26 : vector<8x8xf32>
    %cst_16 = arith.constant dense<0xFF800000> : vector<8xf32>
    %28 = vector.multi_reduction <maximumf>, %27, %cst_16 [1] : vector<8x8xf32> to vector<8xf32>
    %29 = vector.shape_cast %28 : vector<8xf32> to vector<8x1xf32>
    %30 = vector.broadcast %29 : vector<8x1xf32> to vector<8x8xf32>
    %31 = arith.subf %27, %30 : vector<8x8xf32>
    %32 = math.exp %31 : vector<8x8xf32>
    %cst_17 = arith.constant dense<0.000000e+00> : vector<8xf32>
    %33 = vector.multi_reduction <add>, %32, %cst_17 [1] : vector<8x8xf32> to vector<8xf32>
    %34 = vector.shape_cast %33 : vector<8xf32> to vector<8x1xf32>
    %35 = tpu.reciprocal %34 {approx = true} : vector<8x1xf32> -> vector<8x1xf32>
    %36 = vector.broadcast %35 : vector<8x1xf32> to vector<8x8xf32>
    %37 = arith.mulf %32, %36 : vector<8x8xf32>
    %cst_18 = arith.constant dense<0.000000e+00> : vector<8x8xf32>
    %38 = tpu.matmul %37, %21, %cst_18 {dimension_numbers = #tpu.dot_dimension_numbers<[1], [0], [0], [1], [0, 0, 1, 1], [], []>} : vector<8x8xf32>, vector<8x8xf32>, vector<8x8xf32> -> vector<8x8xf32>
    %39 = vector.extract_strided_slice %16 {offsets = [0, 8], sizes = [8, 8], strides = [1, 1]} : vector<8x96xf32> to vector<8x8xf32>
    %40 = vector.extract_strided_slice %16 {offsets = [0, 40], sizes = [8, 8], strides = [1, 1]} : vector<8x96xf32> to vector<8x8xf32>
    %41 = vector.extract_strided_slice %16 {offsets = [0, 72], sizes = [8, 8], strides = [1, 1]} : vector<8x96xf32> to vector<8x8xf32>
    %cst_19 = arith.constant dense<0.000000e+00> : vector<8x8xf32>
    %42 = tpu.matmul %39, %40, %cst_19 {dimension_numbers = #tpu.dot_dimension_numbers<[1], [1], [0], [0], [0, 0, 1, 0], [], []>} : vector<8x8xf32>, vector<8x8xf32>, vector<8x8xf32> -> vector<8x8xf32>
    %c1 = arith.constant 1 : index
    %c0_20 = arith.constant 0 : index
    %c0_21 = arith.constant 0 : index
    %43 = vector.load %arg5[%c1, %c0_20, %c0_21] : memref<4x8x8xf32, #tpu.memory_space<vmem>>, vector<1x8x8xf32>
    %44 = vector.shape_cast %43 : vector<1x8x8xf32> to vector<8x8xf32>
    %45 = arith.addf %42, %44 : vector<8x8xf32>
    %46 = vector.broadcast %18 : vector<1x8xf32> to vector<8x8xf32>
    %47 = arith.addf %45, %46 : vector<8x8xf32>
    %cst_22 = arith.constant dense<0xFF800000> : vector<8xf32>
    %48 = vector.multi_reduction <maximumf>, %47, %cst_22 [1] : vector<8x8xf32> to vector<8xf32>
    %49 = vector.shape_cast %48 : vector<8xf32> to vector<8x1xf32>
    %50 = vector.broadcast %49 : vector<8x1xf32> to vector<8x8xf32>
    %51 = arith.subf %47, %50 : vector<8x8xf32>
    %52 = math.exp %51 : vector<8x8xf32>
    %cst_23 = arith.constant dense<0.000000e+00> : vector<8xf32>
    %53 = vector.multi_reduction <add>, %52, %cst_23 [1] : vector<8x8xf32> to vector<8xf32>
    %54 = vector.shape_cast %53 : vector<8xf32> to vector<8x1xf32>
    %55 = tpu.reciprocal %54 {approx = true} : vector<8x1xf32> -> vector<8x1xf32>
    %56 = vector.broadcast %55 : vector<8x1xf32> to vector<8x8xf32>
    %57 = arith.mulf %52, %56 : vector<8x8xf32>
    %cst_24 = arith.constant dense<0.000000e+00> : vector<8x8xf32>
    %58 = tpu.matmul %57, %41, %cst_24 {dimension_numbers = #tpu.dot_dimension_numbers<[1], [0], [0], [1], [0, 0, 1, 1], [], []>} : vector<8x8xf32>, vector<8x8xf32>, vector<8x8xf32> -> vector<8x8xf32>
    %59 = vector.extract_strided_slice %16 {offsets = [0, 16], sizes = [8, 8], strides = [1, 1]} : vector<8x96xf32> to vector<8x8xf32>
    %60 = vector.extract_strided_slice %16 {offsets = [0, 48], sizes = [8, 8], strides = [1, 1]} : vector<8x96xf32> to vector<8x8xf32>
    %61 = vector.extract_strided_slice %16 {offsets = [0, 80], sizes = [8, 8], strides = [1, 1]} : vector<8x96xf32> to vector<8x8xf32>
    %cst_25 = arith.constant dense<0.000000e+00> : vector<8x8xf32>
    %62 = tpu.matmul %59, %60, %cst_25 {dimension_numbers = #tpu.dot_dimension_numbers<[1], [1], [0], [0], [0, 0, 1, 0], [], []>} : vector<8x8xf32>, vector<8x8xf32>, vector<8x8xf32> -> vector<8x8xf32>
    %c2 = arith.constant 2 : index
    %c0_26 = arith.constant 0 : index
    %c0_27 = arith.constant 0 : index
    %63 = vector.load %arg5[%c2, %c0_26, %c0_27] : memref<4x8x8xf32, #tpu.memory_space<vmem>>, vector<1x8x8xf32>
    %64 = vector.shape_cast %63 : vector<1x8x8xf32> to vector<8x8xf32>
    %65 = arith.addf %62, %64 : vector<8x8xf32>
    %66 = vector.broadcast %18 : vector<1x8xf32> to vector<8x8xf32>
    %67 = arith.addf %65, %66 : vector<8x8xf32>
    %cst_28 = arith.constant dense<0xFF800000> : vector<8xf32>
    %68 = vector.multi_reduction <maximumf>, %67, %cst_28 [1] : vector<8x8xf32> to vector<8xf32>
    %69 = vector.shape_cast %68 : vector<8xf32> to vector<8x1xf32>
    %70 = vector.broadcast %69 : vector<8x1xf32> to vector<8x8xf32>
    %71 = arith.subf %67, %70 : vector<8x8xf32>
    %72 = math.exp %71 : vector<8x8xf32>
    %cst_29 = arith.constant dense<0.000000e+00> : vector<8xf32>
    %73 = vector.multi_reduction <add>, %72, %cst_29 [1] : vector<8x8xf32> to vector<8xf32>
    %74 = vector.shape_cast %73 : vector<8xf32> to vector<8x1xf32>
    %75 = tpu.reciprocal %74 {approx = true} : vector<8x1xf32> -> vector<8x1xf32>
    %76 = vector.broadcast %75 : vector<8x1xf32> to vector<8x8xf32>
    %77 = arith.mulf %72, %76 : vector<8x8xf32>
    %cst_30 = arith.constant dense<0.000000e+00> : vector<8x8xf32>
    %78 = tpu.matmul %77, %61, %cst_30 {dimension_numbers = #tpu.dot_dimension_numbers<[1], [0], [0], [1], [0, 0, 1, 1], [], []>} : vector<8x8xf32>, vector<8x8xf32>, vector<8x8xf32> -> vector<8x8xf32>
    %79 = vector.extract_strided_slice %16 {offsets = [0, 24], sizes = [8, 8], strides = [1, 1]} : vector<8x96xf32> to vector<8x8xf32>
    %80 = vector.extract_strided_slice %16 {offsets = [0, 56], sizes = [8, 8], strides = [1, 1]} : vector<8x96xf32> to vector<8x8xf32>
    %81 = vector.extract_strided_slice %16 {offsets = [0, 88], sizes = [8, 8], strides = [1, 1]} : vector<8x96xf32> to vector<8x8xf32>
    %cst_31 = arith.constant dense<0.000000e+00> : vector<8x8xf32>
    %82 = tpu.matmul %79, %80, %cst_31 {dimension_numbers = #tpu.dot_dimension_numbers<[1], [1], [0], [0], [0, 0, 1, 0], [], []>} : vector<8x8xf32>, vector<8x8xf32>, vector<8x8xf32> -> vector<8x8xf32>
    %c3 = arith.constant 3 : index
    %c0_32 = arith.constant 0 : index
    %c0_33 = arith.constant 0 : index
    %83 = vector.load %arg5[%c3, %c0_32, %c0_33] : memref<4x8x8xf32, #tpu.memory_space<vmem>>, vector<1x8x8xf32>
    %84 = vector.shape_cast %83 : vector<1x8x8xf32> to vector<8x8xf32>
    %85 = arith.addf %82, %84 : vector<8x8xf32>
    %86 = vector.broadcast %18 : vector<1x8xf32> to vector<8x8xf32>
    %87 = arith.addf %85, %86 : vector<8x8xf32>
    %cst_34 = arith.constant dense<0xFF800000> : vector<8xf32>
    %88 = vector.multi_reduction <maximumf>, %87, %cst_34 [1] : vector<8x8xf32> to vector<8xf32>
    %89 = vector.shape_cast %88 : vector<8xf32> to vector<8x1xf32>
    %90 = vector.broadcast %89 : vector<8x1xf32> to vector<8x8xf32>
    %91 = arith.subf %87, %90 : vector<8x8xf32>
    %92 = math.exp %91 : vector<8x8xf32>
    %cst_35 = arith.constant dense<0.000000e+00> : vector<8xf32>
    %93 = vector.multi_reduction <add>, %92, %cst_35 [1] : vector<8x8xf32> to vector<8xf32>
    %94 = vector.shape_cast %93 : vector<8xf32> to vector<8x1xf32>
    %95 = tpu.reciprocal %94 {approx = true} : vector<8x1xf32> -> vector<8x1xf32>
    %96 = vector.broadcast %95 : vector<8x1xf32> to vector<8x8xf32>
    %97 = arith.mulf %92, %96 : vector<8x8xf32>
    %cst_36 = arith.constant dense<0.000000e+00> : vector<8x8xf32>
    %98 = tpu.matmul %97, %81, %cst_36 {dimension_numbers = #tpu.dot_dimension_numbers<[1], [0], [0], [1], [0, 0, 1, 1], [], []>} : vector<8x8xf32>, vector<8x8xf32>, vector<8x8xf32> -> vector<8x8xf32>
    %99 = tpu.concatenate %38, %58, %78, %98 in 1 : vector<8x8xf32>, vector<8x8xf32>, vector<8x8xf32>, vector<8x8xf32> -> vector<8x32xf32>
    %c0_37 = arith.constant 0 : index
    %c0_38 = arith.constant 0 : index
    %100 = vector.load %arg4[%c0_37, %c0_38] : memref<32x32xf32, #tpu.memory_space<vmem>>, vector<32x32xf32>
    %cst_39 = arith.constant dense<0.000000e+00> : vector<8x32xf32>
    %101 = tpu.matmul %99, %100, %cst_39 {dimension_numbers = #tpu.dot_dimension_numbers<[1], [0], [0], [1], [0, 0, 1, 1], [], []>} : vector<8x32xf32>, vector<32x32xf32>, vector<8x32xf32> -> vector<8x32xf32>
    %102 = arith.addf %1, %101 : vector<8x32xf32>
    %c0_40 = arith.constant 0 : index
    %c0_41 = arith.constant 0 : index
    %c0_42 = arith.constant 0 : index
    %103 = vector.load %arg7[%c0_40, %c0_41, %c0_42] : memref<1x8x32xf32, #tpu.memory_space<vmem>>, vector<1x8x32xf32>
    %104 = vector.shape_cast %103 : vector<1x8x32xf32> to vector<8x32xf32>
    %105 = vector.shape_cast %102 : vector<8x32xf32> to vector<1x8x32xf32>
    tpu.vector_store %arg7[%c0_40, %c0_41, %c0_42], %105 {strides = array<i32>} : memref<1x8x32xf32, #tpu.memory_space<vmem>>, vector<1x8x32xf32>,
    return
  }
  func.func @transform_0(%arg0: i32) -> (i32, i32, i32) {
    %c0_i32 = arith.constant 0 : i32
    %c0_i32_0 = arith.constant 0 : i32
    %c0_i32_1 = arith.constant 0 : i32
    return %arg0, %c0_i32, %c0_i32_0 : i32, i32, i32
  }
  func.func @transform_1(%arg0: i32) -> (i32, i32) {
    %c0_i32 = arith.constant 0 : i32
    %c0_i32_0 = arith.constant 0 : i32
    %c0_i32_1 = arith.constant 0 : i32
    return %c0_i32, %c0_i32_0 : i32, i32
  }
  func.func @transform_2(%arg0: i32) -> (i32, i32) {
    %c0_i32 = arith.constant 0 : i32
    %c0_i32_0 = arith.constant 0 : i32
    %c0_i32_1 = arith.constant 0 : i32
    return %c0_i32, %c0_i32_0 : i32, i32
  }
  func.func @transform_3(%arg0: i32) -> (i32, i32) {
    %c0_i32 = arith.constant 0 : i32
    %c0_i32_0 = arith.constant 0 : i32
    %c0_i32_1 = arith.constant 0 : i32
    return %c0_i32, %c0_i32_0 : i32, i32
  }
  func.func @transform_4(%arg0: i32) -> (i32, i32, i32) {
    %c0_i32 = arith.constant 0 : i32
    %c0_i32_0 = arith.constant 0 : i32
    %c0_i32_1 = arith.constant 0 : i32
    %c0_i32_2 = arith.constant 0 : i32
    return %c0_i32, %c0_i32_0, %c0_i32_1 : i32, i32, i32
  }
  func.func @transform_5(%arg0: i32) -> (i32, i32, i32) {
    %c0_i32 = arith.constant 0 : i32
    %c0_i32_0 = arith.constant 0 : i32
    %c0_i32_1 = arith.constant 0 : i32
    return %arg0, %c0_i32, %c0_i32_0 : i32, i32, i32
  }
  func.func @transform_6(%arg0: i32) -> (i32, i32, i32) {
    %c0_i32 = arith.constant 0 : i32
    %c0_i32_0 = arith.constant 0 : i32
    %c0_i32_1 = arith.constant 0 : i32
    return %arg0, %c0_i32, %c0_i32_0 : i32, i32, i32
  }
}

module attributes {stable_mosaic.version = 11 : i64} {
  func.func @_rmsnorm3d_kernel(%arg0: i32, %arg1: memref<1x8x32xf32, #tpu.memory_space<vmem>>, %arg2: memref<1x32xf32, #tpu.memory_space<vmem>>, %arg3: memref<1x8x32xf32, #tpu.memory_space<vmem>>) attributes {dimension_semantics = [#tpu.dimension_semantics<parallel>], iteration_bounds = array<i64: 2>, scalar_prefetch = 0 : i64, scratch_operands = 0 : i64, tpu.core_type = #tpu.core_type<tc>, window_params = [{transform_indices = @transform_0, window_bounds = array<i64: 1, 8, 32>}, {pipeline_mode = #tpu.pipeline_mode<synchronous>, transform_indices = @transform_1, window_bounds = array<i64: 1, 32>}, {transform_indices = @transform_2, window_bounds = array<i64: 1, 8, 32>}]} {
    %c0 = arith.constant 0 : index
    %c0_0 = arith.constant 0 : index
    %c0_1 = arith.constant 0 : index
    %0 = vector.load %arg1[%c0, %c0_0, %c0_1] : memref<1x8x32xf32, #tpu.memory_space<vmem>>, vector<1x8x32xf32>
    %1 = vector.shape_cast %0 : vector<1x8x32xf32> to vector<8x32xf32>
    %c0_2 = arith.constant 0 : index
    %c0_3 = arith.constant 0 : index
    %2 = vector.load %arg2[%c0_2, %c0_3] : memref<1x32xf32, #tpu.memory_space<vmem>>, vector<1x32xf32>
    %3 = arith.mulf %1, %1 : vector<8x32xf32>
    %cst = arith.constant dense<0.000000e+00> : vector<8xf32>
    %4 = vector.multi_reduction <add>, %3, %cst [1] : vector<8x32xf32> to vector<8xf32>
    %5 = vector.shape_cast %4 : vector<8xf32> to vector<8x1xf32>
    %cst_4 = arith.constant 3.200000e+01 : f32
    %6 = vector.broadcast %cst_4 : f32 to vector<8x1xf32>
    %7 = arith.divf %5, %6 : vector<8x1xf32>
    %cst_5 = arith.constant 9.99999997E-7 : f32
    %8 = vector.broadcast %cst_5 : f32 to vector<8x1xf32>
    %9 = arith.addf %7, %8 : vector<8x1xf32>
    %10 = math.rsqrt %9 : vector<8x1xf32>
    %11 = vector.broadcast %10 : vector<8x1xf32> to vector<8x32xf32>
    %12 = arith.mulf %1, %11 : vector<8x32xf32>
    %13 = vector.broadcast %2 : vector<1x32xf32> to vector<8x32xf32>
    %14 = arith.mulf %12, %13 : vector<8x32xf32>
    %c0_6 = arith.constant 0 : index
    %c0_7 = arith.constant 0 : index
    %c0_8 = arith.constant 0 : index
    %15 = vector.load %arg3[%c0_6, %c0_7, %c0_8] : memref<1x8x32xf32, #tpu.memory_space<vmem>>, vector<1x8x32xf32>
    %16 = vector.shape_cast %15 : vector<1x8x32xf32> to vector<8x32xf32>
    %17 = vector.shape_cast %14 : vector<8x32xf32> to vector<1x8x32xf32>
    tpu.vector_store %arg3[%c0_6, %c0_7, %c0_8], %17 {strides = array<i32>} : memref<1x8x32xf32, #tpu.memory_space<vmem>>, vector<1x8x32xf32>,
    return
  }
  func.func @transform_0(%arg0: i32) -> (i32, i32, i32) {
    %c0_i32 = arith.constant 0 : i32
    %c0_i32_0 = arith.constant 0 : i32
    %c0_i32_1 = arith.constant 0 : i32
    return %arg0, %c0_i32, %c0_i32_0 : i32, i32, i32
  }
  func.func @transform_1(%arg0: i32) -> (i32, i32) {
    %c0_i32 = arith.constant 0 : i32
    %c0_i32_0 = arith.constant 0 : i32
    %c0_i32_1 = arith.constant 0 : i32
    return %c0_i32, %c0_i32_0 : i32, i32
  }
  func.func @transform_2(%arg0: i32) -> (i32, i32, i32) {
    %c0_i32 = arith.constant 0 : i32
    %c0_i32_0 = arith.constant 0 : i32
    %c0_i32_1 = arith.constant 0 : i32
    return %arg0, %c0_i32, %c0_i32_0 : i32, i32, i32
  }
}

module attributes {stable_mosaic.version = 11 : i64} {
  func.func @_ffn_block_kernel(%arg0: i32, %arg1: memref<1x8x32xf32, #tpu.memory_space<vmem>>, %arg2: memref<1x32xf32, #tpu.memory_space<vmem>>, %arg3: memref<32x128xf32, #tpu.memory_space<vmem>>, %arg4: memref<64x32xf32, #tpu.memory_space<vmem>>, %arg5: memref<1x8x32xf32, #tpu.memory_space<vmem>>) attributes {dimension_semantics = [#tpu.dimension_semantics<parallel>], iteration_bounds = array<i64: 2>, scalar_prefetch = 0 : i64, scratch_operands = 0 : i64, tpu.core_type = #tpu.core_type<tc>, window_params = [{transform_indices = @transform_0, window_bounds = array<i64: 1, 8, 32>}, {pipeline_mode = #tpu.pipeline_mode<synchronous>, transform_indices = @transform_1, window_bounds = array<i64: 1, 32>}, {pipeline_mode = #tpu.pipeline_mode<synchronous>, transform_indices = @transform_2, window_bounds = array<i64: 32, 128>}, {pipeline_mode = #tpu.pipeline_mode<synchronous>, transform_indices = @transform_3, window_bounds = array<i64: 64, 32>}, {transform_indices = @transform_4, window_bounds = array<i64: 1, 8, 32>}]} {
    %c0 = arith.constant 0 : index
    %c0_0 = arith.constant 0 : index
    %c0_1 = arith.constant 0 : index
    %0 = vector.load %arg1[%c0, %c0_0, %c0_1] : memref<1x8x32xf32, #tpu.memory_space<vmem>>, vector<1x8x32xf32>
    %1 = vector.shape_cast %0 : vector<1x8x32xf32> to vector<8x32xf32>
    %c0_2 = arith.constant 0 : index
    %c0_3 = arith.constant 0 : index
    %2 = vector.load %arg2[%c0_2, %c0_3] : memref<1x32xf32, #tpu.memory_space<vmem>>, vector<1x32xf32>
    %3 = arith.mulf %1, %1 : vector<8x32xf32>
    %cst = arith.constant dense<0.000000e+00> : vector<8xf32>
    %4 = vector.multi_reduction <add>, %3, %cst [1] : vector<8x32xf32> to vector<8xf32>
    %5 = vector.shape_cast %4 : vector<8xf32> to vector<8x1xf32>
    %cst_4 = arith.constant 3.200000e+01 : f32
    %6 = vector.broadcast %cst_4 : f32 to vector<8x1xf32>
    %7 = arith.divf %5, %6 : vector<8x1xf32>
    %cst_5 = arith.constant 9.99999997E-7 : f32
    %8 = vector.broadcast %cst_5 : f32 to vector<8x1xf32>
    %9 = arith.addf %7, %8 : vector<8x1xf32>
    %10 = math.rsqrt %9 : vector<8x1xf32>
    %11 = vector.broadcast %10 : vector<8x1xf32> to vector<8x32xf32>
    %12 = arith.mulf %1, %11 : vector<8x32xf32>
    %13 = vector.broadcast %2 : vector<1x32xf32> to vector<8x32xf32>
    %14 = arith.mulf %12, %13 : vector<8x32xf32>
    %c0_6 = arith.constant 0 : index
    %c0_7 = arith.constant 0 : index
    %15 = vector.load %arg3[%c0_6, %c0_7] : memref<32x128xf32, #tpu.memory_space<vmem>>, vector<32x128xf32>
    %cst_8 = arith.constant dense<0.000000e+00> : vector<8x128xf32>
    %16 = tpu.matmul %14, %15, %cst_8 {dimension_numbers = #tpu.dot_dimension_numbers<[1], [0], [0], [1], [0, 0, 1, 1], [], []>} : vector<8x32xf32>, vector<32x128xf32>, vector<8x128xf32> -> vector<8x128xf32>
    %17 = vector.extract_strided_slice %16 {offsets = [0, 0], sizes = [8, 64], strides = [1, 1]} : vector<8x128xf32> to vector<8x64xf32>
    %18 = vector.extract_strided_slice %16 {offsets = [0, 64], sizes = [8, 64], strides = [1, 1]} : vector<8x128xf32> to vector<8x64xf32>
    %cst_9 = arith.constant 5.000000e-01 : f32
    %19 = vector.broadcast %cst_9 : f32 to vector<8x64xf32>
    %20 = arith.mulf %19, %17 : vector<8x64xf32>
    %cst_10 = arith.constant 4.471500e-02 : f32
    %21 = vector.broadcast %cst_10 : f32 to vector<8x64xf32>
    %22 = arith.mulf %21, %17 : vector<8x64xf32>
    %23 = arith.mulf %22, %17 : vector<8x64xf32>
    %24 = arith.mulf %23, %17 : vector<8x64xf32>
    %25 = arith.addf %17, %24 : vector<8x64xf32>
    %cst_11 = arith.constant 0.797884583 : f32
    %26 = vector.broadcast %cst_11 : f32 to vector<8x64xf32>
    %27 = arith.mulf %26, %25 : vector<8x64xf32>
    %28 = math.tanh %27 : vector<8x64xf32>
    %cst_12 = arith.constant 1.000000e+00 : f32
    %29 = vector.broadcast %cst_12 : f32 to vector<8x64xf32>
    %30 = arith.addf %29, %28 : vector<8x64xf32>
    %31 = arith.mulf %20, %30 : vector<8x64xf32>
    %32 = arith.mulf %31, %18 : vector<8x64xf32>
    %c0_13 = arith.constant 0 : index
    %c0_14 = arith.constant 0 : index
    %33 = vector.load %arg4[%c0_13, %c0_14] : memref<64x32xf32, #tpu.memory_space<vmem>>, vector<64x32xf32>
    %cst_15 = arith.constant dense<0.000000e+00> : vector<8x32xf32>
    %34 = tpu.matmul %32, %33, %cst_15 {dimension_numbers = #tpu.dot_dimension_numbers<[1], [0], [0], [1], [0, 0, 1, 1], [], []>} : vector<8x64xf32>, vector<64x32xf32>, vector<8x32xf32> -> vector<8x32xf32>
    %35 = arith.addf %1, %34 : vector<8x32xf32>
    %c0_16 = arith.constant 0 : index
    %c0_17 = arith.constant 0 : index
    %c0_18 = arith.constant 0 : index
    %36 = vector.load %arg5[%c0_16, %c0_17, %c0_18] : memref<1x8x32xf32, #tpu.memory_space<vmem>>, vector<1x8x32xf32>
    %37 = vector.shape_cast %36 : vector<1x8x32xf32> to vector<8x32xf32>
    %38 = vector.shape_cast %35 : vector<8x32xf32> to vector<1x8x32xf32>
    tpu.vector_store %arg5[%c0_16, %c0_17, %c0_18], %38 {strides = array<i32>} : memref<1x8x32xf32, #tpu.memory_space<vmem>>, vector<1x8x32xf32>,
    return
  }
  func.func @transform_0(%arg0: i32) -> (i32, i32, i32) {
    %c0_i32 = arith.constant 0 : i32
    %c0_i32_0 = arith.constant 0 : i32
    %c0_i32_1 = arith.constant 0 : i32
    return %arg0, %c0_i32, %c0_i32_0 : i32, i32, i32
  }
  func.func @transform_1(%arg0: i32) -> (i32, i32) {
    %c0_i32 = arith.constant 0 : i32
    %c0_i32_0 = arith.constant 0 : i32
    %c0_i32_1 = arith.constant 0 : i32
    return %c0_i32, %c0_i32_0 : i32, i32
  }
  func.func @transform_2(%arg0: i32) -> (i32, i32) {
    %c0_i32 = arith.constant 0 : i32
    %c0_i32_0 = arith.constant 0 : i32
    %c0_i32_1 = arith.constant 0 : i32
    return %c0_i32, %c0_i32_0 : i32, i32
  }
  func.func @transform_3(%arg0: i32) -> (i32, i32) {
    %c0_i32 = arith.constant 0 : i32
    %c0_i32_0 = arith.constant 0 : i32
    %c0_i32_1 = arith.constant 0 : i32
    return %c0_i32, %c0_i32_0 : i32, i32
  }
  func.func @transform_4(%arg0: i32) -> (i32, i32, i32) {
    %c0_i32 = arith.constant 0 : i32
    %c0_i32_0 = arith.constant 0 : i32
    %c0_i32_1 = arith.constant 0 : i32
    return %arg0, %c0_i32, %c0_i32_0 : i32, i32, i32
  }
}

module attributes {stable_mosaic.version = 11 : i64} {
  func.func @_self_attn_block_kernel(%arg0: i32, %arg1: memref<1x8x32xf32, #tpu.memory_space<vmem>>, %arg2: memref<1x32xf32, #tpu.memory_space<vmem>>, %arg3: memref<32x96xf32, #tpu.memory_space<vmem>>, %arg4: memref<32x32xf32, #tpu.memory_space<vmem>>, %arg5: memref<4x8x8xf32, #tpu.memory_space<vmem>>, %arg6: memref<1x8x8xf32, #tpu.memory_space<vmem>>, %arg7: memref<1x8x32xf32, #tpu.memory_space<vmem>>) attributes {dimension_semantics = [#tpu.dimension_semantics<parallel>], iteration_bounds = array<i64: 2>, scalar_prefetch = 0 : i64, scratch_operands = 0 : i64, tpu.core_type = #tpu.core_type<tc>, window_params = [{transform_indices = @transform_0, window_bounds = array<i64: 1, 8, 32>}, {pipeline_mode = #tpu.pipeline_mode<synchronous>, transform_indices = @transform_1, window_bounds = array<i64: 1, 32>}, {pipeline_mode = #tpu.pipeline_mode<synchronous>, transform_indices = @transform_2, window_bounds = array<i64: 32, 96>}, {pipeline_mode = #tpu.pipeline_mode<synchronous>, transform_indices = @transform_3, window_bounds = array<i64: 32, 32>}, {pipeline_mode = #tpu.pipeline_mode<synchronous>, transform_indices = @transform_4, window_bounds = array<i64: 4, 8, 8>}, {transform_indices = @transform_5, window_bounds = array<i64: 1, 8, 8>}, {transform_indices = @transform_6, window_bounds = array<i64: 1, 8, 32>}]} {
    %c0 = arith.constant 0 : index
    %c0_0 = arith.constant 0 : index
    %c0_1 = arith.constant 0 : index
    %0 = vector.load %arg1[%c0, %c0_0, %c0_1] : memref<1x8x32xf32, #tpu.memory_space<vmem>>, vector<1x8x32xf32>
    %1 = vector.shape_cast %0 : vector<1x8x32xf32> to vector<8x32xf32>
    %c0_2 = arith.constant 0 : index
    %c0_3 = arith.constant 0 : index
    %2 = vector.load %arg2[%c0_2, %c0_3] : memref<1x32xf32, #tpu.memory_space<vmem>>, vector<1x32xf32>
    %3 = arith.mulf %1, %1 : vector<8x32xf32>
    %cst = arith.constant dense<0.000000e+00> : vector<8xf32>
    %4 = vector.multi_reduction <add>, %3, %cst [1] : vector<8x32xf32> to vector<8xf32>
    %5 = vector.shape_cast %4 : vector<8xf32> to vector<8x1xf32>
    %cst_4 = arith.constant 3.200000e+01 : f32
    %6 = vector.broadcast %cst_4 : f32 to vector<8x1xf32>
    %7 = arith.divf %5, %6 : vector<8x1xf32>
    %cst_5 = arith.constant 9.99999997E-7 : f32
    %8 = vector.broadcast %cst_5 : f32 to vector<8x1xf32>
    %9 = arith.addf %7, %8 : vector<8x1xf32>
    %10 = math.rsqrt %9 : vector<8x1xf32>
    %11 = vector.broadcast %10 : vector<8x1xf32> to vector<8x32xf32>
    %12 = arith.mulf %1, %11 : vector<8x32xf32>
    %13 = vector.broadcast %2 : vector<1x32xf32> to vector<8x32xf32>
    %14 = arith.mulf %12, %13 : vector<8x32xf32>
    %c0_6 = arith.constant 0 : index
    %c0_7 = arith.constant 0 : index
    %15 = vector.load %arg3[%c0_6, %c0_7] : memref<32x96xf32, #tpu.memory_space<vmem>>, vector<32x96xf32>
    %cst_8 = arith.constant dense<0.000000e+00> : vector<8x96xf32>
    %16 = tpu.matmul %14, %15, %cst_8 {dimension_numbers = #tpu.dot_dimension_numbers<[1], [0], [0], [1], [0, 0, 1, 1], [], []>} : vector<8x32xf32>, vector<32x96xf32>, vector<8x96xf32> -> vector<8x96xf32>
    %c0_9 = arith.constant 0 : index
    %c0_10 = arith.constant 0 : index
    %c0_11 = arith.constant 0 : index
    %17 = vector.load %arg6[%c0_9, %c0_10, %c0_11] : memref<1x8x8xf32, #tpu.memory_space<vmem>>, vector<1x8x8xf32>
    %18 = vector.shape_cast %17 : vector<1x8x8xf32> to vector<8x8xf32>
    %19 = vector.extract_strided_slice %16 {offsets = [0, 0], sizes = [8, 8], strides = [1, 1]} : vector<8x96xf32> to vector<8x8xf32>
    %20 = vector.extract_strided_slice %16 {offsets = [0, 32], sizes = [8, 8], strides = [1, 1]} : vector<8x96xf32> to vector<8x8xf32>
    %21 = vector.extract_strided_slice %16 {offsets = [0, 64], sizes = [8, 8], strides = [1, 1]} : vector<8x96xf32> to vector<8x8xf32>
    %cst_12 = arith.constant dense<0.000000e+00> : vector<8x8xf32>
    %22 = tpu.matmul %19, %20, %cst_12 {dimension_numbers = #tpu.dot_dimension_numbers<[1], [1], [0], [0], [0, 0, 1, 0], [], []>} : vector<8x8xf32>, vector<8x8xf32>, vector<8x8xf32> -> vector<8x8xf32>
    %c0_13 = arith.constant 0 : index
    %c0_14 = arith.constant 0 : index
    %c0_15 = arith.constant 0 : index
    %23 = vector.load %arg5[%c0_13, %c0_14, %c0_15] : memref<4x8x8xf32, #tpu.memory_space<vmem>>, vector<1x8x8xf32>
    %24 = vector.shape_cast %23 : vector<1x8x8xf32> to vector<8x8xf32>
    %25 = arith.addf %22, %24 : vector<8x8xf32>
    %26 = arith.addf %25, %18 : vector<8x8xf32>
    %cst_16 = arith.constant dense<0xFF800000> : vector<8xf32>
    %27 = vector.multi_reduction <maximumf>, %26, %cst_16 [1] : vector<8x8xf32> to vector<8xf32>
    %28 = vector.shape_cast %27 : vector<8xf32> to vector<8x1xf32>
    %29 = vector.broadcast %28 : vector<8x1xf32> to vector<8x8xf32>
    %30 = arith.subf %26, %29 : vector<8x8xf32>
    %31 = math.exp %30 : vector<8x8xf32>
    %cst_17 = arith.constant dense<0.000000e+00> : vector<8xf32>
    %32 = vector.multi_reduction <add>, %31, %cst_17 [1] : vector<8x8xf32> to vector<8xf32>
    %33 = vector.shape_cast %32 : vector<8xf32> to vector<8x1xf32>
    %34 = tpu.reciprocal %33 {approx = true} : vector<8x1xf32> -> vector<8x1xf32>
    %35 = vector.broadcast %34 : vector<8x1xf32> to vector<8x8xf32>
    %36 = arith.mulf %31, %35 : vector<8x8xf32>
    %cst_18 = arith.constant dense<0.000000e+00> : vector<8x8xf32>
    %37 = tpu.matmul %36, %21, %cst_18 {dimension_numbers = #tpu.dot_dimension_numbers<[1], [0], [0], [1], [0, 0, 1, 1], [], []>} : vector<8x8xf32>, vector<8x8xf32>, vector<8x8xf32> -> vector<8x8xf32>
    %38 = vector.extract_strided_slice %16 {offsets = [0, 8], sizes = [8, 8], strides = [1, 1]} : vector<8x96xf32> to vector<8x8xf32>
    %39 = vector.extract_strided_slice %16 {offsets = [0, 40], sizes = [8, 8], strides = [1, 1]} : vector<8x96xf32> to vector<8x8xf32>
    %40 = vector.extract_strided_slice %16 {offsets = [0, 72], sizes = [8, 8], strides = [1, 1]} : vector<8x96xf32> to vector<8x8xf32>
    %cst_19 = arith.constant dense<0.000000e+00> : vector<8x8xf32>
    %41 = tpu.matmul %38, %39, %cst_19 {dimension_numbers = #tpu.dot_dimension_numbers<[1], [1], [0], [0], [0, 0, 1, 0], [], []>} : vector<8x8xf32>, vector<8x8xf32>, vector<8x8xf32> -> vector<8x8xf32>
    %c1 = arith.constant 1 : index
    %c0_20 = arith.constant 0 : index
    %c0_21 = arith.constant 0 : index
    %42 = vector.load %arg5[%c1, %c0_20, %c0_21] : memref<4x8x8xf32, #tpu.memory_space<vmem>>, vector<1x8x8xf32>
    %43 = vector.shape_cast %42 : vector<1x8x8xf32> to vector<8x8xf32>
    %44 = arith.addf %41, %43 : vector<8x8xf32>
    %45 = arith.addf %44, %18 : vector<8x8xf32>
    %cst_22 = arith.constant dense<0xFF800000> : vector<8xf32>
    %46 = vector.multi_reduction <maximumf>, %45, %cst_22 [1] : vector<8x8xf32> to vector<8xf32>
    %47 = vector.shape_cast %46 : vector<8xf32> to vector<8x1xf32>
    %48 = vector.broadcast %47 : vector<8x1xf32> to vector<8x8xf32>
    %49 = arith.subf %45, %48 : vector<8x8xf32>
    %50 = math.exp %49 : vector<8x8xf32>
    %cst_23 = arith.constant dense<0.000000e+00> : vector<8xf32>
    %51 = vector.multi_reduction <add>, %50, %cst_23 [1] : vector<8x8xf32> to vector<8xf32>
    %52 = vector.shape_cast %51 : vector<8xf32> to vector<8x1xf32>
    %53 = tpu.reciprocal %52 {approx = true} : vector<8x1xf32> -> vector<8x1xf32>
    %54 = vector.broadcast %53 : vector<8x1xf32> to vector<8x8xf32>
    %55 = arith.mulf %50, %54 : vector<8x8xf32>
    %cst_24 = arith.constant dense<0.000000e+00> : vector<8x8xf32>
    %56 = tpu.matmul %55, %40, %cst_24 {dimension_numbers = #tpu.dot_dimension_numbers<[1], [0], [0], [1], [0, 0, 1, 1], [], []>} : vector<8x8xf32>, vector<8x8xf32>, vector<8x8xf32> -> vector<8x8xf32>
    %57 = vector.extract_strided_slice %16 {offsets = [0, 16], sizes = [8, 8], strides = [1, 1]} : vector<8x96xf32> to vector<8x8xf32>
    %58 = vector.extract_strided_slice %16 {offsets = [0, 48], sizes = [8, 8], strides = [1, 1]} : vector<8x96xf32> to vector<8x8xf32>
    %59 = vector.extract_strided_slice %16 {offsets = [0, 80], sizes = [8, 8], strides = [1, 1]} : vector<8x96xf32> to vector<8x8xf32>
    %cst_25 = arith.constant dense<0.000000e+00> : vector<8x8xf32>
    %60 = tpu.matmul %57, %58, %cst_25 {dimension_numbers = #tpu.dot_dimension_numbers<[1], [1], [0], [0], [0, 0, 1, 0], [], []>} : vector<8x8xf32>, vector<8x8xf32>, vector<8x8xf32> -> vector<8x8xf32>
    %c2 = arith.constant 2 : index
    %c0_26 = arith.constant 0 : index
    %c0_27 = arith.constant 0 : index
    %61 = vector.load %arg5[%c2, %c0_26, %c0_27] : memref<4x8x8xf32, #tpu.memory_space<vmem>>, vector<1x8x8xf32>
    %62 = vector.shape_cast %61 : vector<1x8x8xf32> to vector<8x8xf32>
    %63 = arith.addf %60, %62 : vector<8x8xf32>
    %64 = arith.addf %63, %18 : vector<8x8xf32>
    %cst_28 = arith.constant dense<0xFF800000> : vector<8xf32>
    %65 = vector.multi_reduction <maximumf>, %64, %cst_28 [1] : vector<8x8xf32> to vector<8xf32>
    %66 = vector.shape_cast %65 : vector<8xf32> to vector<8x1xf32>
    %67 = vector.broadcast %66 : vector<8x1xf32> to vector<8x8xf32>
    %68 = arith.subf %64, %67 : vector<8x8xf32>
    %69 = math.exp %68 : vector<8x8xf32>
    %cst_29 = arith.constant dense<0.000000e+00> : vector<8xf32>
    %70 = vector.multi_reduction <add>, %69, %cst_29 [1] : vector<8x8xf32> to vector<8xf32>
    %71 = vector.shape_cast %70 : vector<8xf32> to vector<8x1xf32>
    %72 = tpu.reciprocal %71 {approx = true} : vector<8x1xf32> -> vector<8x1xf32>
    %73 = vector.broadcast %72 : vector<8x1xf32> to vector<8x8xf32>
    %74 = arith.mulf %69, %73 : vector<8x8xf32>
    %cst_30 = arith.constant dense<0.000000e+00> : vector<8x8xf32>
    %75 = tpu.matmul %74, %59, %cst_30 {dimension_numbers = #tpu.dot_dimension_numbers<[1], [0], [0], [1], [0, 0, 1, 1], [], []>} : vector<8x8xf32>, vector<8x8xf32>, vector<8x8xf32> -> vector<8x8xf32>
    %76 = vector.extract_strided_slice %16 {offsets = [0, 24], sizes = [8, 8], strides = [1, 1]} : vector<8x96xf32> to vector<8x8xf32>
    %77 = vector.extract_strided_slice %16 {offsets = [0, 56], sizes = [8, 8], strides = [1, 1]} : vector<8x96xf32> to vector<8x8xf32>
    %78 = vector.extract_strided_slice %16 {offsets = [0, 88], sizes = [8, 8], strides = [1, 1]} : vector<8x96xf32> to vector<8x8xf32>
    %cst_31 = arith.constant dense<0.000000e+00> : vector<8x8xf32>
    %79 = tpu.matmul %76, %77, %cst_31 {dimension_numbers = #tpu.dot_dimension_numbers<[1], [1], [0], [0], [0, 0, 1, 0], [], []>} : vector<8x8xf32>, vector<8x8xf32>, vector<8x8xf32> -> vector<8x8xf32>
    %c3 = arith.constant 3 : index
    %c0_32 = arith.constant 0 : index
    %c0_33 = arith.constant 0 : index
    %80 = vector.load %arg5[%c3, %c0_32, %c0_33] : memref<4x8x8xf32, #tpu.memory_space<vmem>>, vector<1x8x8xf32>
    %81 = vector.shape_cast %80 : vector<1x8x8xf32> to vector<8x8xf32>
    %82 = arith.addf %79, %81 : vector<8x8xf32>
    %83 = arith.addf %82, %18 : vector<8x8xf32>
    %cst_34 = arith.constant dense<0xFF800000> : vector<8xf32>
    %84 = vector.multi_reduction <maximumf>, %83, %cst_34 [1] : vector<8x8xf32> to vector<8xf32>
    %85 = vector.shape_cast %84 : vector<8xf32> to vector<8x1xf32>
    %86 = vector.broadcast %85 : vector<8x1xf32> to vector<8x8xf32>
    %87 = arith.subf %83, %86 : vector<8x8xf32>
    %88 = math.exp %87 : vector<8x8xf32>
    %cst_35 = arith.constant dense<0.000000e+00> : vector<8xf32>
    %89 = vector.multi_reduction <add>, %88, %cst_35 [1] : vector<8x8xf32> to vector<8xf32>
    %90 = vector.shape_cast %89 : vector<8xf32> to vector<8x1xf32>
    %91 = tpu.reciprocal %90 {approx = true} : vector<8x1xf32> -> vector<8x1xf32>
    %92 = vector.broadcast %91 : vector<8x1xf32> to vector<8x8xf32>
    %93 = arith.mulf %88, %92 : vector<8x8xf32>
    %cst_36 = arith.constant dense<0.000000e+00> : vector<8x8xf32>
    %94 = tpu.matmul %93, %78, %cst_36 {dimension_numbers = #tpu.dot_dimension_numbers<[1], [0], [0], [1], [0, 0, 1, 1], [], []>} : vector<8x8xf32>, vector<8x8xf32>, vector<8x8xf32> -> vector<8x8xf32>
    %95 = tpu.concatenate %37, %56, %75, %94 in 1 : vector<8x8xf32>, vector<8x8xf32>, vector<8x8xf32>, vector<8x8xf32> -> vector<8x32xf32>
    %c0_37 = arith.constant 0 : index
    %c0_38 = arith.constant 0 : index
    %96 = vector.load %arg4[%c0_37, %c0_38] : memref<32x32xf32, #tpu.memory_space<vmem>>, vector<32x32xf32>
    %cst_39 = arith.constant dense<0.000000e+00> : vector<8x32xf32>
    %97 = tpu.matmul %95, %96, %cst_39 {dimension_numbers = #tpu.dot_dimension_numbers<[1], [0], [0], [1], [0, 0, 1, 1], [], []>} : vector<8x32xf32>, vector<32x32xf32>, vector<8x32xf32> -> vector<8x32xf32>
    %98 = arith.addf %1, %97 : vector<8x32xf32>
    %c0_40 = arith.constant 0 : index
    %c0_41 = arith.constant 0 : index
    %c0_42 = arith.constant 0 : index
    %99 = vector.load %arg7[%c0_40, %c0_41, %c0_42] : memref<1x8x32xf32, #tpu.memory_space<vmem>>, vector<1x8x32xf32>
    %100 = vector.shape_cast %99 : vector<1x8x32xf32> to vector<8x32xf32>
    %101 = vector.shape_cast %98 : vector<8x32xf32> to vector<1x8x32xf32>
    tpu.vector_store %arg7[%c0_40, %c0_41, %c0_42], %101 {strides = array<i32>} : memref<1x8x32xf32, #tpu.memory_space<vmem>>, vector<1x8x32xf32>,
    return
  }
  func.func @transform_0(%arg0: i32) -> (i32, i32, i32) {
    %c0_i32 = arith.constant 0 : i32
    %c0_i32_0 = arith.constant 0 : i32
    %c0_i32_1 = arith.constant 0 : i32
    return %arg0, %c0_i32, %c0_i32_0 : i32, i32, i32
  }
  func.func @transform_1(%arg0: i32) -> (i32, i32) {
    %c0_i32 = arith.constant 0 : i32
    %c0_i32_0 = arith.constant 0 : i32
    %c0_i32_1 = arith.constant 0 : i32
    return %c0_i32, %c0_i32_0 : i32, i32
  }
  func.func @transform_2(%arg0: i32) -> (i32, i32) {
    %c0_i32 = arith.constant 0 : i32
    %c0_i32_0 = arith.constant 0 : i32
    %c0_i32_1 = arith.constant 0 : i32
    return %c0_i32, %c0_i32_0 : i32, i32
  }
  func.func @transform_3(%arg0: i32) -> (i32, i32) {
    %c0_i32 = arith.constant 0 : i32
    %c0_i32_0 = arith.constant 0 : i32
    %c0_i32_1 = arith.constant 0 : i32
    return %c0_i32, %c0_i32_0 : i32, i32
  }
  func.func @transform_4(%arg0: i32) -> (i32, i32, i32) {
    %c0_i32 = arith.constant 0 : i32
    %c0_i32_0 = arith.constant 0 : i32
    %c0_i32_1 = arith.constant 0 : i32
    %c0_i32_2 = arith.constant 0 : i32
    return %c0_i32, %c0_i32_0, %c0_i32_1 : i32, i32, i32
  }
  func.func @transform_5(%arg0: i32) -> (i32, i32, i32) {
    %c0_i32 = arith.constant 0 : i32
    %c0_i32_0 = arith.constant 0 : i32
    %c0_i32_1 = arith.constant 0 : i32
    return %arg0, %c0_i32, %c0_i32_0 : i32, i32, i32
  }
  func.func @transform_6(%arg0: i32) -> (i32, i32, i32) {
    %c0_i32 = arith.constant 0 : i32
    %c0_i32_0 = arith.constant 0 : i32
    %c0_i32_1 = arith.constant 0 : i32
    return %arg0, %c0_i32, %c0_i32_0 : i32, i32, i32
  }
}

module attributes {stable_mosaic.version = 11 : i64} {
  func.func @_final_head_kernel(%arg0: i32, %arg1: memref<1x8x32xf32, #tpu.memory_space<vmem>>, %arg2: memref<1x32xf32, #tpu.memory_space<vmem>>, %arg3: memref<32x128xf32, #tpu.memory_space<vmem>>, %arg4: memref<1x8x128xf32, #tpu.memory_space<vmem>>) attributes {dimension_semantics = [#tpu.dimension_semantics<parallel>], iteration_bounds = array<i64: 2>, scalar_prefetch = 0 : i64, scratch_operands = 0 : i64, tpu.core_type = #tpu.core_type<tc>, window_params = [{transform_indices = @transform_0, window_bounds = array<i64: 1, 8, 32>}, {pipeline_mode = #tpu.pipeline_mode<synchronous>, transform_indices = @transform_1, window_bounds = array<i64: 1, 32>}, {pipeline_mode = #tpu.pipeline_mode<synchronous>, transform_indices = @transform_2, window_bounds = array<i64: 32, 128>}, {transform_indices = @transform_3, window_bounds = array<i64: 1, 8, 128>}]} {
    %c0 = arith.constant 0 : index
    %c0_0 = arith.constant 0 : index
    %c0_1 = arith.constant 0 : index
    %0 = vector.load %arg1[%c0, %c0_0, %c0_1] : memref<1x8x32xf32, #tpu.memory_space<vmem>>, vector<1x8x32xf32>
    %1 = vector.shape_cast %0 : vector<1x8x32xf32> to vector<8x32xf32>
    %c0_2 = arith.constant 0 : index
    %c0_3 = arith.constant 0 : index
    %2 = vector.load %arg2[%c0_2, %c0_3] : memref<1x32xf32, #tpu.memory_space<vmem>>, vector<1x32xf32>
    %3 = arith.mulf %1, %1 : vector<8x32xf32>
    %cst = arith.constant dense<0.000000e+00> : vector<8xf32>
    %4 = vector.multi_reduction <add>, %3, %cst [1] : vector<8x32xf32> to vector<8xf32>
    %5 = vector.shape_cast %4 : vector<8xf32> to vector<8x1xf32>
    %cst_4 = arith.constant 3.200000e+01 : f32
    %6 = vector.broadcast %cst_4 : f32 to vector<8x1xf32>
    %7 = arith.divf %5, %6 : vector<8x1xf32>
    %cst_5 = arith.constant 9.99999997E-7 : f32
    %8 = vector.broadcast %cst_5 : f32 to vector<8x1xf32>
    %9 = arith.addf %7, %8 : vector<8x1xf32>
    %10 = math.rsqrt %9 : vector<8x1xf32>
    %11 = vector.broadcast %10 : vector<8x1xf32> to vector<8x32xf32>
    %12 = arith.mulf %1, %11 : vector<8x32xf32>
    %13 = vector.broadcast %2 : vector<1x32xf32> to vector<8x32xf32>
    %14 = arith.mulf %12, %13 : vector<8x32xf32>
    %c0_6 = arith.constant 0 : index
    %c0_7 = arith.constant 0 : index
    %15 = vector.load %arg3[%c0_6, %c0_7] : memref<32x128xf32, #tpu.memory_space<vmem>>, vector<32x128xf32>
    %cst_8 = arith.constant dense<0.000000e+00> : vector<8x128xf32>
    %16 = tpu.matmul %14, %15, %cst_8 {dimension_numbers = #tpu.dot_dimension_numbers<[1], [0], [0], [1], [0, 0, 1, 1], [], []>} : vector<8x32xf32>, vector<32x128xf32>, vector<8x128xf32> -> vector<8x128xf32>
    %c0_9 = arith.constant 0 : index
    %c0_10 = arith.constant 0 : index
    %c0_11 = arith.constant 0 : index
    %17 = vector.load %arg4[%c0_9, %c0_10, %c0_11] : memref<1x8x128xf32, #tpu.memory_space<vmem>>, vector<1x8x128xf32>
    %18 = vector.shape_cast %17 : vector<1x8x128xf32> to vector<8x128xf32>
    %19 = vector.shape_cast %16 : vector<8x128xf32> to vector<1x8x128xf32>
    tpu.vector_store %arg4[%c0_9, %c0_10, %c0_11], %19 {strides = array<i32>} : memref<1x8x128xf32, #tpu.memory_space<vmem>>, vector<1x8x128xf32>,
    return
  }
  func.func @transform_0(%arg0: i32) -> (i32, i32, i32) {
    %c0_i32 = arith.constant 0 : i32
    %c0_i32_0 = arith.constant 0 : i32
    %c0_i32_1 = arith.constant 0 : i32
    return %arg0, %c0_i32, %c0_i32_0 : i32, i32, i32
  }
  func.func @transform_1(%arg0: i32) -> (i32, i32) {
    %c0_i32 = arith.constant 0 : i32
    %c0_i32_0 = arith.constant 0 : i32
    %c0_i32_1 = arith.constant 0 : i32
    return %c0_i32, %c0_i32_0 : i32, i32
  }
  func.func @transform_2(%arg0: i32) -> (i32, i32) {
    %c0_i32 = arith.constant 0 : i32
    %c0_i32_0 = arith.constant 0 : i32
    %c0_i32_1 = arith.constant 0 : i32
    return %c0_i32, %c0_i32_0 : i32, i32
  }
  func.func @transform_3(%arg0: i32) -> (i32, i32, i32) {
    %c0_i32 = arith.constant 0 : i32
    %c0_i32_0 = arith.constant 0 : i32
    %c0_i32_1 = arith.constant 0 : i32
    return %arg0, %c0_i32, %c0_i32_0 : i32, i32, i32
  }
}

module attributes {stable_mosaic.version = 11 : i64} {
  func.func @_cross_attn_block_kernel(%arg0: i32, %arg1: memref<1x8x32xf32, #tpu.memory_space<vmem>>, %arg2: memref<1x8x32xf32, #tpu.memory_space<vmem>>, %arg3: memref<1x32xf32, #tpu.memory_space<vmem>>, %arg4: memref<32x32xf32, #tpu.memory_space<vmem>>, %arg5: memref<32x64xf32, #tpu.memory_space<vmem>>, %arg6: memref<32x32xf32, #tpu.memory_space<vmem>>, %arg7: memref<1x1x8xf32, #tpu.memory_space<vmem>>, %arg8: memref<1x8x32xf32, #tpu.memory_space<vmem>>) attributes {dimension_semantics = [#tpu.dimension_semantics<parallel>], iteration_bounds = array<i64: 2>, scalar_prefetch = 0 : i64, scratch_operands = 0 : i64, tpu.core_type = #tpu.core_type<tc>, window_params = [{transform_indices = @transform_0, window_bounds = array<i64: 1, 8, 32>}, {transform_indices = @transform_1, window_bounds = array<i64: 1, 8, 32>}, {pipeline_mode = #tpu.pipeline_mode<synchronous>, transform_indices = @transform_2, window_bounds = array<i64: 1, 32>}, {pipeline_mode = #tpu.pipeline_mode<synchronous>, transform_indices = @transform_3, window_bounds = array<i64: 32, 32>}, {pipeline_mode = #tpu.pipeline_mode<synchronous>, transform_indices = @transform_4, window_bounds = array<i64: 32, 64>}, {pipeline_mode = #tpu.pipeline_mode<synchronous>, transform_indices = @transform_5, window_bounds = array<i64: 32, 32>}, {transform_indices = @transform_6, window_bounds = array<i64: 1, 1, 8>}, {transform_indices = @transform_7, window_bounds = array<i64: 1, 8, 32>}]} {
    %c0 = arith.constant 0 : index
    %c0_0 = arith.constant 0 : index
    %c0_1 = arith.constant 0 : index
    %0 = vector.load %arg1[%c0, %c0_0, %c0_1] : memref<1x8x32xf32, #tpu.memory_space<vmem>>, vector<1x8x32xf32>
    %1 = vector.shape_cast %0 : vector<1x8x32xf32> to vector<8x32xf32>
    %c0_2 = arith.constant 0 : index
    %c0_3 = arith.constant 0 : index
    %c0_4 = arith.constant 0 : index
    %2 = vector.load %arg2[%c0_2, %c0_3, %c0_4] : memref<1x8x32xf32, #tpu.memory_space<vmem>>, vector<1x8x32xf32>
    %3 = vector.shape_cast %2 : vector<1x8x32xf32> to vector<8x32xf32>
    %c0_5 = arith.constant 0 : index
    %c0_6 = arith.constant 0 : index
    %4 = vector.load %arg3[%c0_5, %c0_6] : memref<1x32xf32, #tpu.memory_space<vmem>>, vector<1x32xf32>
    %5 = arith.mulf %1, %1 : vector<8x32xf32>
    %cst = arith.constant dense<0.000000e+00> : vector<8xf32>
    %6 = vector.multi_reduction <add>, %5, %cst [1] : vector<8x32xf32> to vector<8xf32>
    %7 = vector.shape_cast %6 : vector<8xf32> to vector<8x1xf32>
    %cst_7 = arith.constant 3.200000e+01 : f32
    %8 = vector.broadcast %cst_7 : f32 to vector<8x1xf32>
    %9 = arith.divf %7, %8 : vector<8x1xf32>
    %cst_8 = arith.constant 9.99999997E-7 : f32
    %10 = vector.broadcast %cst_8 : f32 to vector<8x1xf32>
    %11 = arith.addf %9, %10 : vector<8x1xf32>
    %12 = math.rsqrt %11 : vector<8x1xf32>
    %13 = vector.broadcast %12 : vector<8x1xf32> to vector<8x32xf32>
    %14 = arith.mulf %1, %13 : vector<8x32xf32>
    %15 = vector.broadcast %4 : vector<1x32xf32> to vector<8x32xf32>
    %16 = arith.mulf %14, %15 : vector<8x32xf32>
    %c0_9 = arith.constant 0 : index
    %c0_10 = arith.constant 0 : index
    %17 = vector.load %arg4[%c0_9, %c0_10] : memref<32x32xf32, #tpu.memory_space<vmem>>, vector<32x32xf32>
    %cst_11 = arith.constant dense<0.000000e+00> : vector<8x32xf32>
    %18 = tpu.matmul %16, %17, %cst_11 {dimension_numbers = #tpu.dot_dimension_numbers<[1], [0], [0], [1], [0, 0, 1, 1], [], []>} : vector<8x32xf32>, vector<32x32xf32>, vector<8x32xf32> -> vector<8x32xf32>
    %c0_12 = arith.constant 0 : index
    %c0_13 = arith.constant 0 : index
    %19 = vector.load %arg5[%c0_12, %c0_13] : memref<32x64xf32, #tpu.memory_space<vmem>>, vector<32x64xf32>
    %cst_14 = arith.constant dense<0.000000e+00> : vector<8x64xf32>
    %20 = tpu.matmul %3, %19, %cst_14 {dimension_numbers = #tpu.dot_dimension_numbers<[1], [0], [0], [1], [0, 0, 1, 1], [], []>} : vector<8x32xf32>, vector<32x64xf32>, vector<8x64xf32> -> vector<8x64xf32>
    %c0_15 = arith.constant 0 : index
    %c0_16 = arith.constant 0 : index
    %c0_17 = arith.constant 0 : index
    %21 = vector.load %arg7[%c0_15, %c0_16, %c0_17] : memref<1x1x8xf32, #tpu.memory_space<vmem>>, vector<1x1x8xf32>
    %22 = vector.shape_cast %21 : vector<1x1x8xf32> to vector<1x8xf32>
    %23 = vector.extract_strided_slice %18 {offsets = [0, 0], sizes = [8, 8], strides = [1, 1]} : vector<8x32xf32> to vector<8x8xf32>
    %24 = vector.extract_strided_slice %20 {offsets = [0, 0], sizes = [8, 8], strides = [1, 1]} : vector<8x64xf32> to vector<8x8xf32>
    %25 = vector.extract_strided_slice %20 {offsets = [0, 32], sizes = [8, 8], strides = [1, 1]} : vector<8x64xf32> to vector<8x8xf32>
    %cst_18 = arith.constant dense<0.000000e+00> : vector<8x8xf32>
    %26 = tpu.matmul %23, %24, %cst_18 {dimension_numbers = #tpu.dot_dimension_numbers<[1], [1], [0], [0], [0, 0, 1, 0], [], []>} : vector<8x8xf32>, vector<8x8xf32>, vector<8x8xf32> -> vector<8x8xf32>
    %27 = vector.broadcast %22 : vector<1x8xf32> to vector<8x8xf32>
    %28 = arith.addf %26, %27 : vector<8x8xf32>
    %cst_19 = arith.constant dense<0xFF800000> : vector<8xf32>
    %29 = vector.multi_reduction <maximumf>, %28, %cst_19 [1] : vector<8x8xf32> to vector<8xf32>
    %30 = vector.shape_cast %29 : vector<8xf32> to vector<8x1xf32>
    %31 = vector.broadcast %30 : vector<8x1xf32> to vector<8x8xf32>
    %32 = arith.subf %28, %31 : vector<8x8xf32>
    %33 = math.exp %32 : vector<8x8xf32>
    %cst_20 = arith.constant dense<0.000000e+00> : vector<8xf32>
    %34 = vector.multi_reduction <add>, %33, %cst_20 [1] : vector<8x8xf32> to vector<8xf32>
    %35 = vector.shape_cast %34 : vector<8xf32> to vector<8x1xf32>
    %36 = tpu.reciprocal %35 {approx = true} : vector<8x1xf32> -> vector<8x1xf32>
    %37 = vector.broadcast %36 : vector<8x1xf32> to vector<8x8xf32>
    %38 = arith.mulf %33, %37 : vector<8x8xf32>
    %cst_21 = arith.constant dense<0.000000e+00> : vector<8x8xf32>
    %39 = tpu.matmul %38, %25, %cst_21 {dimension_numbers = #tpu.dot_dimension_numbers<[1], [0], [0], [1], [0, 0, 1, 1], [], []>} : vector<8x8xf32>, vector<8x8xf32>, vector<8x8xf32> -> vector<8x8xf32>
    %40 = vector.extract_strided_slice %18 {offsets = [0, 8], sizes = [8, 8], strides = [1, 1]} : vector<8x32xf32> to vector<8x8xf32>
    %41 = vector.extract_strided_slice %20 {offsets = [0, 8], sizes = [8, 8], strides = [1, 1]} : vector<8x64xf32> to vector<8x8xf32>
    %42 = vector.extract_strided_slice %20 {offsets = [0, 40], sizes = [8, 8], strides = [1, 1]} : vector<8x64xf32> to vector<8x8xf32>
    %cst_22 = arith.constant dense<0.000000e+00> : vector<8x8xf32>
    %43 = tpu.matmul %40, %41, %cst_22 {dimension_numbers = #tpu.dot_dimension_numbers<[1], [1], [0], [0], [0, 0, 1, 0], [], []>} : vector<8x8xf32>, vector<8x8xf32>, vector<8x8xf32> -> vector<8x8xf32>
    %44 = vector.broadcast %22 : vector<1x8xf32> to vector<8x8xf32>
    %45 = arith.addf %43, %44 : vector<8x8xf32>
    %cst_23 = arith.constant dense<0xFF800000> : vector<8xf32>
    %46 = vector.multi_reduction <maximumf>, %45, %cst_23 [1] : vector<8x8xf32> to vector<8xf32>
    %47 = vector.shape_cast %46 : vector<8xf32> to vector<8x1xf32>
    %48 = vector.broadcast %47 : vector<8x1xf32> to vector<8x8xf32>
    %49 = arith.subf %45, %48 : vector<8x8xf32>
    %50 = math.exp %49 : vector<8x8xf32>
    %cst_24 = arith.constant dense<0.000000e+00> : vector<8xf32>
    %51 = vector.multi_reduction <add>, %50, %cst_24 [1] : vector<8x8xf32> to vector<8xf32>
    %52 = vector.shape_cast %51 : vector<8xf32> to vector<8x1xf32>
    %53 = tpu.reciprocal %52 {approx = true} : vector<8x1xf32> -> vector<8x1xf32>
    %54 = vector.broadcast %53 : vector<8x1xf32> to vector<8x8xf32>
    %55 = arith.mulf %50, %54 : vector<8x8xf32>
    %cst_25 = arith.constant dense<0.000000e+00> : vector<8x8xf32>
    %56 = tpu.matmul %55, %42, %cst_25 {dimension_numbers = #tpu.dot_dimension_numbers<[1], [0], [0], [1], [0, 0, 1, 1], [], []>} : vector<8x8xf32>, vector<8x8xf32>, vector<8x8xf32> -> vector<8x8xf32>
    %57 = vector.extract_strided_slice %18 {offsets = [0, 16], sizes = [8, 8], strides = [1, 1]} : vector<8x32xf32> to vector<8x8xf32>
    %58 = vector.extract_strided_slice %20 {offsets = [0, 16], sizes = [8, 8], strides = [1, 1]} : vector<8x64xf32> to vector<8x8xf32>
    %59 = vector.extract_strided_slice %20 {offsets = [0, 48], sizes = [8, 8], strides = [1, 1]} : vector<8x64xf32> to vector<8x8xf32>
    %cst_26 = arith.constant dense<0.000000e+00> : vector<8x8xf32>
    %60 = tpu.matmul %57, %58, %cst_26 {dimension_numbers = #tpu.dot_dimension_numbers<[1], [1], [0], [0], [0, 0, 1, 0], [], []>} : vector<8x8xf32>, vector<8x8xf32>, vector<8x8xf32> -> vector<8x8xf32>
    %61 = vector.broadcast %22 : vector<1x8xf32> to vector<8x8xf32>
    %62 = arith.addf %60, %61 : vector<8x8xf32>
    %cst_27 = arith.constant dense<0xFF800000> : vector<8xf32>
    %63 = vector.multi_reduction <maximumf>, %62, %cst_27 [1] : vector<8x8xf32> to vector<8xf32>
    %64 = vector.shape_cast %63 : vector<8xf32> to vector<8x1xf32>
    %65 = vector.broadcast %64 : vector<8x1xf32> to vector<8x8xf32>
    %66 = arith.subf %62, %65 : vector<8x8xf32>
    %67 = math.exp %66 : vector<8x8xf32>
    %cst_28 = arith.constant dense<0.000000e+00> : vector<8xf32>
    %68 = vector.multi_reduction <add>, %67, %cst_28 [1] : vector<8x8xf32> to vector<8xf32>
    %69 = vector.shape_cast %68 : vector<8xf32> to vector<8x1xf32>
    %70 = tpu.reciprocal %69 {approx = true} : vector<8x1xf32> -> vector<8x1xf32>
    %71 = vector.broadcast %70 : vector<8x1xf32> to vector<8x8xf32>
    %72 = arith.mulf %67, %71 : vector<8x8xf32>
    %cst_29 = arith.constant dense<0.000000e+00> : vector<8x8xf32>
    %73 = tpu.matmul %72, %59, %cst_29 {dimension_numbers = #tpu.dot_dimension_numbers<[1], [0], [0], [1], [0, 0, 1, 1], [], []>} : vector<8x8xf32>, vector<8x8xf32>, vector<8x8xf32> -> vector<8x8xf32>
    %74 = vector.extract_strided_slice %18 {offsets = [0, 24], sizes = [8, 8], strides = [1, 1]} : vector<8x32xf32> to vector<8x8xf32>
    %75 = vector.extract_strided_slice %20 {offsets = [0, 24], sizes = [8, 8], strides = [1, 1]} : vector<8x64xf32> to vector<8x8xf32>
    %76 = vector.extract_strided_slice %20 {offsets = [0, 56], sizes = [8, 8], strides = [1, 1]} : vector<8x64xf32> to vector<8x8xf32>
    %cst_30 = arith.constant dense<0.000000e+00> : vector<8x8xf32>
    %77 = tpu.matmul %74, %75, %cst_30 {dimension_numbers = #tpu.dot_dimension_numbers<[1], [1], [0], [0], [0, 0, 1, 0], [], []>} : vector<8x8xf32>, vector<8x8xf32>, vector<8x8xf32> -> vector<8x8xf32>
    %78 = vector.broadcast %22 : vector<1x8xf32> to vector<8x8xf32>
    %79 = arith.addf %77, %78 : vector<8x8xf32>
    %cst_31 = arith.constant dense<0xFF800000> : vector<8xf32>
    %80 = vector.multi_reduction <maximumf>, %79, %cst_31 [1] : vector<8x8xf32> to vector<8xf32>
    %81 = vector.shape_cast %80 : vector<8xf32> to vector<8x1xf32>
    %82 = vector.broadcast %81 : vector<8x1xf32> to vector<8x8xf32>
    %83 = arith.subf %79, %82 : vector<8x8xf32>
    %84 = math.exp %83 : vector<8x8xf32>
    %cst_32 = arith.constant dense<0.000000e+00> : vector<8xf32>
    %85 = vector.multi_reduction <add>, %84, %cst_32 [1] : vector<8x8xf32> to vector<8xf32>
    %86 = vector.shape_cast %85 : vector<8xf32> to vector<8x1xf32>
    %87 = tpu.reciprocal %86 {approx = true} : vector<8x1xf32> -> vector<8x1xf32>
    %88 = vector.broadcast %87 : vector<8x1xf32> to vector<8x8xf32>
    %89 = arith.mulf %84, %88 : vector<8x8xf32>
    %cst_33 = arith.constant dense<0.000000e+00> : vector<8x8xf32>
    %90 = tpu.matmul %89, %76, %cst_33 {dimension_numbers = #tpu.dot_dimension_numbers<[1], [0], [0], [1], [0, 0, 1, 1], [], []>} : vector<8x8xf32>, vector<8x8xf32>, vector<8x8xf32> -> vector<8x8xf32>
    %91 = tpu.concatenate %39, %56, %73, %90 in 1 : vector<8x8xf32>, vector<8x8xf32>, vector<8x8xf32>, vector<8x8xf32> -> vector<8x32xf32>
    %c0_34 = arith.constant 0 : index
    %c0_35 = arith.constant 0 : index
    %92 = vector.load %arg6[%c0_34, %c0_35] : memref<32x32xf32, #tpu.memory_space<vmem>>, vector<32x32xf32>
    %cst_36 = arith.constant dense<0.000000e+00> : vector<8x32xf32>
    %93 = tpu.matmul %91, %92, %cst_36 {dimension_numbers = #tpu.dot_dimension_numbers<[1], [0], [0], [1], [0, 0, 1, 1], [], []>} : vector<8x32xf32>, vector<32x32xf32>, vector<8x32xf32> -> vector<8x32xf32>
    %94 = arith.addf %1, %93 : vector<8x32xf32>
    %c0_37 = arith.constant 0 : index
    %c0_38 = arith.constant 0 : index
    %c0_39 = arith.constant 0 : index
    %95 = vector.load %arg8[%c0_37, %c0_38, %c0_39] : memref<1x8x32xf32, #tpu.memory_space<vmem>>, vector<1x8x32xf32>
    %96 = vector.shape_cast %95 : vector<1x8x32xf32> to vector<8x32xf32>
    %97 = vector.shape_cast %94 : vector<8x32xf32> to vector<1x8x32xf32>
    tpu.vector_store %arg8[%c0_37, %c0_38, %c0_39], %97 {strides = array<i32>} : memref<1x8x32xf32, #tpu.memory_space<vmem>>, vector<1x8x32xf32>,
    return
  }
  func.func @transform_0(%arg0: i32) -> (i32, i32, i32) {
    %c0_i32 = arith.constant 0 : i32
    %c0_i32_0 = arith.constant 0 : i32
    %c0_i32_1 = arith.constant 0 : i32
    return %arg0, %c0_i32, %c0_i32_0 : i32, i32, i32
  }
  func.func @transform_1(%arg0: i32) -> (i32, i32, i32) {
    %c0_i32 = arith.constant 0 : i32
    %c0_i32_0 = arith.constant 0 : i32
    %c0_i32_1 = arith.constant 0 : i32
    return %arg0, %c0_i32, %c0_i32_0 : i32, i32, i32
  }
  func.func @transform_2(%arg0: i32) -> (i32, i32) {
    %c0_i32 = arith.constant 0 : i32
    %c0_i32_0 = arith.constant 0 : i32
    %c0_i32_1 = arith.constant 0 : i32
    return %c0_i32, %c0_i32_0 : i32, i32
  }
  func.func @transform_3(%arg0: i32) -> (i32, i32) {
    %c0_i32 = arith.constant 0 : i32
    %c0_i32_0 = arith.constant 0 : i32
    %c0_i32_1 = arith.constant 0 : i32
    return %c0_i32, %c0_i32_0 : i32, i32
  }
  func.func @transform_4(%arg0: i32) -> (i32, i32) {
    %c0_i32 = arith.constant 0 : i32
    %c0_i32_0 = arith.constant 0 : i32
    %c0_i32_1 = arith.constant 0 : i32
    return %c0_i32, %c0_i32_0 : i32, i32
  }
  func.func @transform_5(%arg0: i32) -> (i32, i32) {
    %c0_i32 = arith.constant 0 : i32
    %c0_i32_0 = arith.constant 0 : i32
    %c0_i32_1 = arith.constant 0 : i32
    return %c0_i32, %c0_i32_0 : i32, i32
  }
  func.func @transform_6(%arg0: i32) -> (i32, i32, i32) {
    %c0_i32 = arith.constant 0 : i32
    %c0_i32_0 = arith.constant 0 : i32
    %c0_i32_1 = arith.constant 0 : i32
    return %arg0, %c0_i32, %c0_i32_0 : i32, i32, i32
  }
  func.func @transform_7(%arg0: i32) -> (i32, i32, i32) {
    %c0_i32 = arith.constant 0 : i32
    %c0_i32_0 = arith.constant 0 : i32
    %c0_i32_1 = arith.constant 0 : i32
    return %arg0, %c0_i32, %c0_i32_0 : i32, i32, i32
  }
}

</mosaic_0001>

<bundles_post_ra>
// kernel: mt5_forward.16
= control target key start
LH: loop header
LB: loop body
LE: loop exit
PB: predicated region body
PF: predicated region fallthrough
CT: control target
= control target key end

     0   :  { %s271_s9 = smov 0   ;;  %s300_s0 = inlined_call_operand.vmem [shape: f32[2,8,32], index: 0, kind: input, shape index: {}]   ;;  %s301_s1 = inlined_call_operand.vmem [shape: f32[1,32], index: 1, kind: input, shape index: {}]   ;;  %s302_s2 = inlined_call_operand.vmem [shape: f32[2,8,32], index: 2, kind: output, shape index: {}]  }
   0x1 LB: > { %s224_s10 = sadd.s32 4294967295, %s253_s9   ;;  %p228_p0 = scmp.ge.s32.totalorder %s253_s9, 1  ;;  %s253_s9 = sphi %s271_s9, %s12_s9  }
   0x2   : > { %p111_p1 = scmp.lt.s32.totalorder %s253_s9, 3 }
   0x4   : > { %p112_p2 = pnand %p228_p0, %p111_p1 }
   0x5   : > { %p131_p3 = scmp.lt.s32.totalorder (!%p112_p2), %s224_s10, 1 }
   0x6   : > { %115 = sbr.rel (%p112_p2) target bundleno = 161 (0xa1), region = 28 }
   0xb   : > { %s304_s10 = smov (!%p131_p3, %s224_s10), 1  ;;  %vm142_vm0 = vcmask 261120   ;;  %v255_v3 = vmov 32.0   ;;  %v242_v19 = vld [vmem:[%s301_s1] ss:$0 sm:$0xff] }
   0xc   : > { %s229_s11 = sshll.u32 %s304_s10, 3  ;;  %243 = vrcp.f32 %v255_v3 }
   0xd   : > { %s134_s14 = scalar_lea.vmem %s300_s0, %s229_s11  ;;  %s138_s19 = scalar_lea.vmem %s302_s2, %s229_s11 }
   0xe   : > { %v139_v0 = vld [vmem:[%s134_s14] sm:$0xff] }
   0xf   : > { %v141_v1 = vmul.f32 %v139_v0, %v139_v0 }
  0x11   : > { %v143_v2 = vsel %vm142_vm0, %v141_v1, 0.0 }
  0x12   : > { %144 = vadd.xlane.f32.xlu0 %v143_v2  ;;  %v244_v4 = vpop.eup %243 }
  0x13   : > { %v147_v5 = vmul.f32 32.0, %v244_v4  ;;  %vm151_vm1 = vweird.f32 %v244_v4 }
  0x15   : > { %v148_v6 = vsub.f32 1.0, %v147_v5 }
  0x17   : > { %v149_v7 = vmul.f32 %v244_v4, %v148_v6 }
  0x19   : > { %v150_v8 = vadd.f32 %v244_v4, %v149_v7 }
  0x1b   : > { %v152_v9 = vsel %vm151_vm1, %v244_v4, %v150_v8 }
  0x85   : > { %v145_v10 = vpop.xlane.xlu0 %144 }
  0x86   : > { %v153_v11 = vmul.f32 %v152_v9, %v145_v10 }
  0x88   : > { %v154_v12 = vadd.f32 1e-06, %v153_v11 }
  0x8a   : > { %245 = vrsqrt.f32 %v154_v12  ;;  %vm161_vm3 = vweird.f32 %v154_v12 }
  0x90   : > { %v246_v13 = vpop.eup %245 }
  0x91   : > { %v156_v14 = vmul.f32 %v246_v13, %v154_v12  ;;  %vm162_vm2 = vweird.f32 %v246_v13 }
  0x92   : > { %vm163_vm4 = vmor %vm161_vm3, %vm162_vm2 }
  0x93   : > { %v157_v15 = vmul.f32 %v246_v13, %v156_v14 }
  0x95   : > { %v158_v16 = vmul.f32 0.5, %v157_v15 }
  0x97   : > { %v159_v17 = vsub.f32 1.5, %v158_v16 }
  0x99   : > { %v160_v18 = vmul.f32 %v246_v13, %v159_v17 }
  0x9b   : > { %v164_v20 = vsel %vm163_vm4, %v246_v13, %v160_v18 }
  0x9c   : > { %v165_v21 = vmul.f32 %v164_v20, %v139_v0 }
  0x9e   : > { %v169_v22 = vmul.f32 %v242_v19, %v165_v21 }
  0xa0   : > { %170 = vst.msk [vmem:[%s138_s19] sm:$0xff] %vm142_vm0, %v169_v22 }
  0xa1 PF: > { %s12_s9 = sadd.s32 1, %s253_s9  }
  0xa2   : > { %p9_p4 = scmp.ge.s32.totalorder %s12_s9, 4  }
  0xa4   :  { %11 = sbr.rel (!%p9_p4) target bundleno = 1 (0x1), region = 58 }

// kernel: mt5_forward.13
= control target key start
LH: loop header
LB: loop body
LE: loop exit
PB: predicated region body
PF: predicated region fallthrough
CT: control target
= control target key end

     0   :  { %s415_s15 = smov 0   ;;  %s487_s0 = inlined_call_operand.vmem [shape: f32[2,8,32], index: 0, kind: input, shape index: {}]   ;;  %s488_s1 = inlined_call_operand.vmem [shape: f32[1,32], index: 1, kind: input, shape index: {}]   ;;  %s489_s2 = inlined_call_operand.vmem [shape: f32[32,128], index: 2, kind: input, shape index: {}]   ;;  %s490_s3 = inlined_call_operand.vmem [shape: f32[64,32], index: 3, kind: input, shape index: {}]   ;;  %s491_s4 = inlined_call_operand.vmem [shape: f32[2,8,32], index: 4, kind: output, shape index: {}]  }
   0x1 LB: > { %s352_s16 = sadd.s32 4294967295, %s386_s15   ;;  %p356_p0 = scmp.ge.s32.totalorder %s386_s15, 1  ;;  %s386_s15 = sphi %s415_s15, %s14_s15  }
   0x2   : > { %p161_p1 = scmp.lt.s32.totalorder %s386_s15, 3 }
   0x4   : > { %p162_p2 = pnand %p356_p0, %p161_p1 }
   0x5   : > { %p185_p3 = scmp.lt.s32.totalorder (!%p162_p2), %s352_s16, 1  ;;  %s389_s22 = smov (!%p162_p2), 64  }
   0x6   : > { %165 = sbr.rel (%p162_p2) target bundleno = 532 (0x214), region = 36 }
   0xb   : > { %s493_s16 = smov (!%p185_p3, %s352_s16), 1  ;;  %vm196_vm0 = vcmask 261120   ;;  %v388_v3 = vmov 32.0   ;;  %v227_v7 = vld [vmem:[%s489_s2 + $0x18] sm:$0xff]  ;;  %v226_v8 = vld [vmem:[%s489_s2 + $0x10] sm:$0xff]  ;;  %v225_v9 = vld [vmem:[%s489_s2 + $0x8] sm:$0xff] }
   0xc   : > { %s357_s17 = sshll.u32 %s493_s16, 3  ;;  %374 = vrcp.f32 %v388_v3  ;;  %243 = vmatpush.msra.mxu0 %v227_v7  ;;  %v224_v11 = vld [vmem:[%s489_s2] sm:$0xff]  ;;  %v272_v27 = vld [vmem:[%s490_s3 + $0x38] sm:$0xff]  ;;  %v271_v28 = vld [vmem:[%s490_s3 + $0x30] sm:$0xff]  ;;  %vm273_vm5 = vcmask 523264  }
   0xd   : > { %s188_s20 = scalar_lea.vmem %s487_s0, %s357_s17  ;;  %v373_v23 = vld [vmem:[%s488_s1] ss:$0 sm:$0xff]  ;;  %285 = vmatpush.msra.mxu1 %v272_v27  ;;  %v270_v29 = vld [vmem:[%s490_s3 + $0x28] sm:$0xff]  ;;  %v268_v31 = vld [vmem:[%s490_s3 + $0x18] sm:$0xff]  ;;  %s192_s27 = scalar_lea.vmem %s491_s4, %s357_s17 }
   0xe   : > { %v431_v0 = vld [vmem:[%s188_s20] sm:$0xff]  ;;  %244 = vmatpush.msra.mxu0 %v226_v8  ;;  %v267_v32 = vld [vmem:[%s490_s3 + $0x10] sm:$0xff]  ;;  %v266_v33 = vld [vmem:[%s490_s3 + $0x8] sm:$0xff] }
   0xf   : > { %v195_v1 = vmul.f32 %v431_v0, %v431_v0  ;;  %286 = vmatpush.msra.mxu1 %v271_v28  ;;  %v269_v30 = vld [vmem:[%s490_s3 + $0x20] sm:$0xff] }
  0x10   : > { %245 = vmatpush.msra.mxu0 %v225_v9  ;;  %v265_v36 = vld [vmem:[%s490_s3] sm:$0xff] }
  0x11   : > { %v197_v2 = vsel %vm196_vm0, %v195_v1, 0.0  ;;  %287 = vmatpush.msra.mxu1 %v270_v29 }
  0x12   : > { %198 = vadd.xlane.f32.xlu0 %v197_v2  ;;  %v375_v4 = vpop.eup %374  ;;  %246 = vmatpush.msra.mxu0 %v224_v11 }
  0x13   : > { %v201_v5 = vmul.f32 32.0, %v375_v4  ;;  %vm205_vm1 = vweird.f32 %v375_v4  ;;  %288 = vmatpush.msra.mxu1 %v269_v30 }
  0x15   : > { %v202_v6 = vsub.f32 1.0, %v201_v5  ;;  %289 = vmatpush.msra.mxu1 %v268_v31 }
  0x17   : > { %v203_v10 = vmul.f32 %v375_v4, %v202_v6  ;;  %290 = vmatpush.msra.mxu1 %v267_v32 }
  0x19   : > { %v204_v12 = vadd.f32 %v375_v4, %v203_v10  ;;  %291 = vmatpush.msra.mxu1 %v266_v33 }
  0x1b   : > { %v206_v13 = vsel %vm205_vm1, %v375_v4, %v204_v12  ;;  %292 = vmatpush.msra.mxu1 %v265_v36 }
  0x85   : > { %v199_v14 = vpop.xlane.xlu0 %198 }
  0x86   : > { %v207_v15 = vmul.f32 %v206_v13, %v199_v14 }
  0x88   : > { %v208_v16 = vadd.f32 1e-06, %v207_v15 }
  0x8a   : > { %376 = vrsqrt.f32 %v208_v16  ;;  %vm215_vm3 = vweird.f32 %v208_v16 }
  0x90   : > { %v377_v17 = vpop.eup %376 }
  0x91   : > { %v210_v18 = vmul.f32 %v377_v17, %v208_v16  ;;  %vm216_vm2 = vweird.f32 %v377_v17 }
  0x92   : > { %vm217_vm4 = vmor %vm215_vm3, %vm216_vm2 }
  0x93   : > { %v211_v19 = vmul.f32 %v377_v17, %v210_v18 }
  0x95   : > { %v212_v20 = vmul.f32 0.5, %v211_v19 }
  0x97   : > { %v213_v21 = vsub.f32 1.5, %v212_v20 }
  0x99   : > { %v214_v22 = vmul.f32 %v377_v17, %v213_v21 }
  0x9b   : > { %v218_v24 = vsel %vm217_vm4, %v377_v17, %v214_v22 }
  0x9c   : > { %v219_v25 = vmul.f32 %v218_v24, %v431_v0 }
  0x9e   : > { %v223_v26 = vmul.f32 %v373_v23, %v219_v25 }
  0xa0   : > { %359 = vmatmul.msk.f32.vlgmr.msra.gmra.mxu0 %vm196_vm0, %v223_v26 }
 0x11d   : > { %v248_v34 = vpop.f32.mrf.mxu0 }
 0x11e   : > { %261 = vrot.lane.b32.xlu0 %v248_v34, %s389_s22  ;;  %v252_v35 = vmul.f32 0.044715, %v248_v34  ;;  %v251_v43 = vmul.f32 0.5, %v248_v34 }
 0x120   : > { %v253_v37 = vmul.f32 %v252_v35, %v248_v34 }
 0x122   : > { %v254_v38 = vmul.f32 %v253_v37, %v248_v34 }
 0x124   : > { %v255_v39 = vadd.f32 %v254_v38, %v248_v34 }
 0x126   : > { %v256_v40 = vmul.f32 0.7978846, %v255_v39 }
 0x128   : > { %378 = vtanh.f32 %v256_v40 }
 0x12e   : > { %v379_v41 = vpop.eup %378 }
 0x12f   : > { %v258_v42 = vadd.f32 1.0, %v379_v41 }
 0x131   : > { %v259_v44 = vmul.f32 %v258_v42, %v251_v43 }
 0x190   : > { %v262_v45 = vpop.permute.xlu0 %261 }
 0x191   : > { %v264_v46 = vmul.f32 %v262_v45, %v259_v44 }
 0x193   : > { %360 = vmatmul.msk.f32.vlgmr.msra.gmra.mxu1 %vm273_vm5, %v264_v46 }
 0x210   : > { %v294_v47 = vpop.f32.mrf.mxu1 }
 0x211   : > { %v297_v48 = vadd.f32 %v294_v47, %v431_v0 }
 0x213   : > { %298 = vst.msk [vmem:[%s192_s27] sm:$0xff] %vm196_vm0, %v297_v48 }
 0x214 PF: > { %s14_s15 = sadd.s32 1, %s386_s15  }
 0x215   : > { %p11_p4 = scmp.ge.s32.totalorder %s14_s15, 4  }
 0x217   :  { %13 = sbr.rel (!%p11_p4) target bundleno = 1 (0x1), region = 66 }

// kernel: mt5_forward.12
= control target key start
LH: loop header
LB: loop body
LE: loop exit
PB: predicated region body
PF: predicated region fallthrough
CT: control target
= control target key end

     0   :  { %s831_s21 = smov 0   ;;  %s948_s0 = inlined_call_operand.vmem [shape: f32[2,8,32], index: 0, kind: input, shape index: {}]   ;;  %s949_s1 = inlined_call_operand.vmem [shape: f32[1,32], index: 1, kind: input, shape index: {}]   ;;  %s950_s2 = inlined_call_operand.vmem [shape: f32[32,96], index: 2, kind: input, shape index: {}]   ;;  %s951_s3 = inlined_call_operand.vmem [shape: f32[32,32], index: 3, kind: input, shape index: {}]   ;;  %s952_s4 = inlined_call_operand.vmem [shape: f32[4,8,8], index: 4, kind: input, shape index: {}]   ;;  %s953_s5 = inlined_call_operand.vmem [shape: f32[2,1,8], index: 5, kind: input, shape index: {}]   ;;  %s954_s6 = inlined_call_operand.vmem [shape: f32[2,8,32], index: 6, kind: output, shape index: {}]  }
   0x1 LB: > { %s702_s22 = sadd.s32 4294967295, %s779_s21   ;;  %p706_p0 = scmp.ge.s32.totalorder %s779_s21, 1  ;;  %s779_s21 = sphi %s831_s21, %s16_s21  }
   0x2   : > { %p219_p1 = scmp.lt.s32.totalorder %s779_s21, 3 }
   0x4   : > { %p220_p2 = pnand %p706_p0, %p219_p1 }
   0x5   : > { %p250_p3 = scmp.lt.s32.totalorder (!%p220_p2), %s702_s22, 1  ;;  %s782_s16 = smov (!%p220_p2), 80  }
   0x6   : > { %223 = sbr.rel (%p220_p2) target bundleno = 1204 (0x4b4), region = 44  ;;  %s783_s17 = smov (!%p220_p2), 88  }
   0x7   : > { %s784_s18 = smov (!%p220_p2), 96   ;;  %s785_s19 = smov (!%p220_p2), 72  }
   0x8   : > { %s786_s20 = smov (!%p220_p2), 120   ;;  %s787_s24 = smov (!%p220_p2), 104  }
   0x9   : > { %s788_s25 = smov (!%p220_p2), 112   ;;  %s790_s13 = smov (!%p220_p2), 40  }
   0xa   : > { %s791_s14 = smov (!%p220_p2), 56   ;;  %s792_s15 = smov (!%p220_p2), 48  }
   0xb   : > { %s956_s22 = smov (!%p250_p3, %s702_s22), 1  ;;  %vm264_vm0 = vcmask 261120   ;;  %v781_v3 = vmov 32.0   ;;  %v295_v7 = vld [vmem:[%s950_s2 + $0x18] sm:$0xff]  ;;  %v294_v8 = vld [vmem:[%s950_s2 + $0x10] sm:$0xff]  ;;  %v293_v9 = vld [vmem:[%s950_s2 + $0x8] sm:$0xff] }
   0xc   : > { %s707_s23 = sshll.u32 %s956_s22, 3  ;;  %s256_s26 = scalar_lea.vmem %s953_s5, %s956_s22  ;;  %753 = vrcp.f32 %v781_v3  ;;  %311 = vmatpush.msra.mxu0 %v295_v7  ;;  %v292_v11 = vld [vmem:[%s950_s2] sm:$0xff]  ;;  %vm324_vm5 = vcmask 64512   ;;  %v713_v41 = vld [vmem:[%s952_s4 + $0x8] sm:$0xff]  ;;  %v717_v43 = vld [vmem:[%s952_s4 + $0x10] sm:$0xff]  ;;  %vm607_vm6 = vcmask 130048  }
   0xd   : > { %s253_s29 = scalar_lea.vmem %s948_s0, %s707_s23  ;;  %v752_v23 = vld [vmem:[%s949_s1] ss:$0 sm:$0xff]  ;;  %v721_v45 = vld [vmem:[%s952_s4 + $0x18] sm:$0xff]  ;;  %vm609_vm7 = vcmask 195584   ;;  %s260_s9 = scalar_lea.vmem %s954_s6, %s707_s23 }
   0xe   : > { %v851_v0 = vld [vmem:[%s253_s29] sm:$0xff]  ;;  %312 = vmatpush.msra.mxu0 %v294_v8 }
   0xf   : > { %v263_v1 = vmul.f32 %v851_v0, %v851_v0  ;;  %v320_v35 = vld [vmem:[%s952_s4] sm:$0xff] }
  0x10   : > { %313 = vmatpush.msra.mxu0 %v293_v9  ;;  %v751_v37 = vld [vmem:[%s256_s26] ss:$0 sm:$0xff]  ;;  %s789_s26 = smov 64  }
  0x11   : > { %v265_v2 = vsel %vm264_vm0, %v263_v1, 0.0 }
  0x12   : > { %266 = vadd.xlane.f32.xlu0 %v265_v2  ;;  %v754_v4 = vpop.eup %753  ;;  %314 = vmatpush.msra.mxu0 %v292_v11 }
  0x13   : > { %v269_v5 = vmul.f32 32.0, %v754_v4  ;;  %vm273_vm1 = vweird.f32 %v754_v4 }
  0x15   : > { %v270_v6 = vsub.f32 1.0, %v269_v5 }
  0x17   : > { %v271_v10 = vmul.f32 %v754_v4, %v270_v6 }
  0x19   : > { %v272_v12 = vadd.f32 %v754_v4, %v271_v10 }
  0x1b   : > { %v274_v13 = vsel %vm273_vm1, %v754_v4, %v272_v12 }
  0x85   : > { %v267_v14 = vpop.xlane.xlu0 %266 }
  0x86   : > { %v275_v15 = vmul.f32 %v274_v13, %v267_v14 }
  0x88   : > { %v276_v16 = vadd.f32 1e-06, %v275_v15 }
  0x8a   : > { %755 = vrsqrt.f32 %v276_v16  ;;  %vm283_vm3 = vweird.f32 %v276_v16 }
  0x90   : > { %v756_v17 = vpop.eup %755 }
  0x91   : > { %v278_v18 = vmul.f32 %v756_v17, %v276_v16  ;;  %vm284_vm2 = vweird.f32 %v756_v17 }
  0x92   : > { %vm285_vm4 = vmor %vm283_vm3, %vm284_vm2 }
  0x93   : > { %v279_v19 = vmul.f32 %v756_v17, %v278_v18 }
  0x95   : > { %v280_v20 = vmul.f32 0.5, %v279_v19 }
  0x97   : > { %v281_v21 = vsub.f32 1.5, %v280_v20 }
  0x99   : > { %v282_v22 = vmul.f32 %v756_v17, %v281_v21 }
  0x9b   : > { %v286_v24 = vsel %vm285_vm4, %v756_v17, %v282_v22 }
  0x9c   : > { %v287_v25 = vmul.f32 %v286_v24, %v851_v0 }
  0x9e   : > { %v291_v26 = vmul.f32 %v752_v23, %v287_v25 }
  0xa0   : > { %709 = vmatmul.msk.f32.vlgmr.msra.gmra.mxu0 %vm264_vm0, %v291_v26 }
 0x11d   : > { %v873_v27 = vpop.f32.mrf.mxu0 }
 0x11e   : > { %462 = vrot.lane.b32.xlu2 %v873_v27, %s782_s16  ;;  %394 = vrot.lane.b32.xlu1 %v873_v27, %s783_s17  ;;  %s793_s16 = smov 8   ;;  %s794_s17 = smov 24  }
 0x11f   : > { %322 = vrot.lane.b32.xlu0 %v873_v27, %s784_s18  ;;  %s795_s18 = smov 16  }
 0x126   : > { %530 = vrot.lane.b32.xlu2 %v873_v27, %s785_s19  ;;  %392 = vrot.lane.b32.xlu1 %v873_v27, %s786_s20 }
 0x12e   : > { %528 = vrot.lane.b32.xlu2 %v873_v27, %s787_s24  ;;  %460 = vrot.lane.b32.xlu1 %v873_v27, %s788_s25 }
 0x178   : > { %v463_v28 = vpop.permute.xlu2 %462 }
 0x180   : > { %v531_v29 = vpop.permute.xlu2 %530 }
 0x181   : > { %722 = vmatpush.xpose.msk.msrb.mxu0 %vm324_vm5, %v531_v29 }
 0x188   : > { %v529_v30 = vpop.permute.xlu2 %528 }
 0x189   : > { %723 = vmatmul.msk.f32.vlgmr.msrb.gmra.mxu0 %vm324_vm5, %v529_v30 }
 0x190   : > { %v395_v31 = vpop.permute.xlu1 %394 }
 0x191   : > { %v323_v32 = vpop.permute.xlu0 %322  ;;  %714 = vmatpush.xpose.msk.msra.mxu3 %vm324_vm5, %v395_v31 }
 0x192   : > { %710 = vmatpush.xpose.msk.msra.mxu1 %vm324_vm5, %v323_v32 }
 0x195   : > { %711 = vmatmul.msk.f32.vlgmr.msra.gmra.mxu1 %vm324_vm5, %v873_v27 }
 0x196   : > { %718 = vmatpush.xpose.msk.msrb.mxu1 %vm324_vm5, %v463_v28 }
 0x198   : > { %v393_v33 = vpop.permute.xlu1 %392 }
 0x199   : > { %715 = vmatmul.msk.f32.vlgmr.msra.gmra.mxu3 %vm324_vm5, %v393_v33  ;;  %v614_v33 = vld [vmem:[%s951_s3 + $0x18] sm:$0xff] }
 0x19a   : > { %630 = vmatpush.msra.mxu1 %v614_v33 }
 0x1a0   : > { %v461_v34 = vpop.permute.xlu1 %460 }
 0x1a1   : > { %719 = vmatmul.msk.f32.vlgmr.msrb.gmra.mxu1 %vm324_vm5, %v461_v34  ;;  %v613_v34 = vld [vmem:[%s951_s3 + $0x10] sm:$0xff] }
 0x1a2   : > { %631 = vmatpush.msra.mxu1 %v613_v34 }
 0x206   : > { %v553_v46 = vpop.f32.mrf.mxu0 }
 0x207   : > { %v554_v50 = vadd.f32 %v721_v45, %v553_v46 }
 0x209   : > { %v556_v54 = vadd.f32 %v751_v37, %v554_v50 }
 0x20b   : > { %v557_v55 = vsel %vm324_vm5, %v556_v54, -inf }
 0x212   : > { %v346_v36 = vpop.f32.mrf.mxu1 }
 0x213   : > { %v347_v38 = vadd.f32 %v346_v36, %v320_v35  ;;  %v612_v35 = vld [vmem:[%s951_s3 + $0x8] sm:$0xff]  ;;  %v611_v36 = vld [vmem:[%s951_s3] sm:$0xff] }
 0x214   : > { %632 = vmatpush.msra.mxu1 %v612_v35 }
 0x215   : > { %v352_v39 = vadd.f32 %v751_v37, %v347_v38 }
 0x216   : > { %633 = vmatpush.msra.mxu1 %v611_v36 }
 0x217   : > { %v353_v40 = vsel %vm324_vm5, %v352_v39, -inf }
 0x218   : > { %354 = vmax.xlane.f32.xlu1 %v353_v40 }
 0x21c   : > { %v417_v42 = vpop.f32.mrf.mxu3 }
 0x21d   : > { %v418_v44 = vadd.f32 %v713_v41, %v417_v42 }
 0x21e   : > { %v485_v47 = vpop.f32.mrf.mxu1 }
 0x21f   : > { %v486_v48 = vadd.f32 %v717_v43, %v485_v47  ;;  %v420_v49 = vadd.f32 %v751_v37, %v418_v44 }
 0x221   : > { %v421_v51 = vsel %vm324_vm5, %v420_v49, -inf  ;;  %v488_v52 = vadd.f32 %v751_v37, %v486_v48 }
 0x222   : > { %422 = vmax.xlane.f32.xlu2 %v421_v51 }
 0x223   : > { %v489_v53 = vsel %vm324_vm5, %v488_v52, -inf }
 0x224   : > { %490 = vmax.xlane.f32.xlu0 %v489_v53 }
 0x22a   : > { %558 = vmax.xlane.f32.xlu2 %v557_v55 }
 0x242   : > { %364 = vrot.lane.b32.xlu2 %v873_v27, %s789_s26 }
 0x24a   : > { %568 = vrot.lane.b32.xlu2 %v873_v27, %s790_s13 }
 0x28b   : > { %v355_v56 = vpop.xlane.xlu1 %354 }
 0x28c   : > { %v356_v57 = vsub.f32 %v352_v39, %v355_v56 }
 0x28e   : > { %v357_v58 = vmul.f32 1.442695, %v356_v57 }
 0x290   : > { %757 = vpow2.f32 %v357_v58 }
 0x295   : > { %v423_v59 = vpop.xlane.xlu2 %422 }
 0x296   : > { %v758_v60 = vpop.eup %757  ;;  %v424_v4 = vsub.f32 %v420_v49, %v423_v59 }
 0x297   : > { %v491_v61 = vpop.xlane.xlu0 %490  ;;  %v359_v62 = vsel %vm324_vm5, %v758_v60, 0.0 }
 0x298   : > { %v492_v63 = vsub.f32 %v488_v52, %v491_v61  ;;  %360 = vadd.xlane.f32.xlu1 %v359_v62  ;;  %v425_v8 = vmul.f32 1.442695, %v424_v4 }
 0x29a   : > { %v493_v1 = vmul.f32 1.442695, %v492_v63 }
 0x29c   : > { %759 = vpow2.f32 %v493_v1 }
 0x29d   : > { %v559_v2 = vpop.xlane.xlu2 %558 }
 0x29e   : > { %v560_v3 = vsub.f32 %v556_v54, %v559_v2 }
 0x2a0   : > { %v561_v5 = vmul.f32 1.442695, %v560_v3 }
 0x2a2   : > { %v760_v6 = vpop.eup %759  ;;  %761 = vpow2.f32 %v561_v5 }
 0x2a3   : > { %v495_v7 = vsel %vm324_vm5, %v760_v6, 0.0  ;;  %763 = vpow2.f32 %v425_v8 }
 0x2a4   : > { %496 = vadd.xlane.f32.xlu1 %v495_v7 }
 0x2a5   : > { %v365_v9 = vpop.permute.xlu2 %364 }
 0x2a6   : > { %385 = vmatpush.msra.mxu2 %v365_v9 }
 0x2a8   : > { %v762_v10 = vpop.eup %761 }
 0x2a9   : > { %v563_v11 = vsel %vm324_vm5, %v762_v10, 0.0  ;;  %v764_v12 = vpop.eup %763 }
 0x2aa   : > { %564 = vadd.xlane.f32.xlu0 %v563_v11  ;;  %v427_v13 = vsel %vm324_vm5, %v764_v12, 0.0 }
 0x2ad   : > { %v569_v23 = vpop.permute.xlu2 %568 }
 0x2b2   : > { %428 = vadd.xlane.f32.xlu0 %v427_v13 }
 0x2bd   : > { %432 = vrot.lane.b32.xlu1 %v873_v27, %s791_s14 }
 0x2c6   : > { %500 = vrot.lane.b32.xlu0 %v873_v27, %s792_s15 }
 0x30b   : > { %v361_v14 = vpop.xlane.xlu1 %360 }
 0x30c   : > { %765 = vrcp.f32 %v361_v14 }
 0x312   : > { %v766_v15 = vpop.eup %765 }
 0x313   : > { %v363_v16 = vmul.f32 %v766_v15, %v758_v60 }
 0x315   : > { %712 = vmatmul.msk.f32.vlgmr.msra.gmra.mxu2 %vm324_vm5, %v363_v16 }
 0x317   : > { %v497_v19 = vpop.xlane.xlu1 %496 }
 0x31d   : > { %v565_v17 = vpop.xlane.xlu0 %564 }
 0x325   : > { %v429_v18 = vpop.xlane.xlu0 %428 }
 0x326   : > { %767 = vrcp.f32 %v429_v18 }
 0x327   : > { %769 = vrcp.f32 %v565_v17 }
 0x328   : > { %771 = vrcp.f32 %v497_v19 }
 0x32c   : > { %v768_v20 = vpop.eup %767 }
 0x32d   : > { %v431_v22 = vmul.f32 %v768_v20, %v764_v12  ;;  %v770_v24 = vpop.eup %769 }
 0x32e   : > { %v772_v25 = vpop.eup %771  ;;  %v567_v26 = vmul.f32 %v770_v24, %v762_v10 }
 0x32f   : > { %v433_v21 = vpop.permute.xlu1 %432  ;;  %v499_v28 = vmul.f32 %v772_v25, %v760_v6 }
 0x330   : > { %453 = vmatpush.msrb.mxu2 %v433_v21 }
 0x331   : > { %716 = vmatmul.msk.f32.vlgmr.msrb.gmra.mxu2 %vm324_vm5, %v431_v22 }
 0x332   : > { %589 = vmatpush.msra.mxu2 %v569_v23 }
 0x338   : > { %v501_v27 = vpop.permute.xlu0 %500 }
 0x339   : > { %521 = vmatpush.msrb.mxu3 %v501_v27  ;;  %724 = vmatmul.msk.f32.vlgmr.msra.gmra.mxu2 %vm324_vm5, %v567_v26 }
 0x33a   : > { %720 = vmatmul.msk.f32.vlgmr.msrb.gmra.mxu3 %vm324_vm5, %v499_v28 }
 0x398   : > { %v387_v29 = vpop.f32.mrf.mxu2 }
 0x3b4   : > { %v455_v30 = vpop.f32.mrf.mxu2 }
 0x3b5   : > { %595 = vrot.lane.b32.xlu2 %v455_v30, %s793_s16 }
 0x3bc   : > { %v591_v31 = vpop.f32.mrf.mxu2 }
 0x3bd   : > { %v523_v32 = vpop.f32.mrf.mxu3  ;;  %603 = vrot.lane.b32.xlu1 %v591_v31, %s794_s17 }
 0x3be   : > { %599 = vrot.lane.b32.xlu0 %v523_v32, %s795_s18 }
 0x40f   : > { %v596_v37 = vpop.permute.xlu2 %595 }
 0x410   : > { %v606_v38 = vsel %vm324_vm5, %v387_v29, %v596_v37 }
 0x42f   : > { %v604_v40 = vpop.permute.xlu1 %603 }
 0x430   : > { %v600_v39 = vpop.permute.xlu0 %599 }
 0x431   : > { %v608_v41 = vsel %vm607_vm6, %v606_v38, %v600_v39 }
 0x432   : > { %v610_v42 = vsel %vm609_vm7, %v608_v41, %v604_v40 }
 0x433   : > { %725 = vmatmul.msk.f32.vlgmr.msra.gmra.mxu1 %vm264_vm0, %v610_v42 }
 0x4b0   : > { %v635_v43 = vpop.f32.mrf.mxu1 }
 0x4b1   : > { %v638_v44 = vadd.f32 %v635_v43, %v851_v0 }
 0x4b3   : > { %639 = vst.msk [vmem:[%s260_s9] sm:$0xff] %vm264_vm0, %v638_v44 }
 0x4b4 PF: > { %s16_s21 = sadd.s32 1, %s779_s21  }
 0x4b5   : > { %p13_p4 = scmp.ge.s32.totalorder %s16_s21, 4  }
 0x4b7   :  { %15 = sbr.rel (!%p13_p4) target bundleno = 1 (0x1), region = 80 }

// kernel: mt5_forward.17
= control target key start
LH: loop header
LB: loop body
LE: loop exit
PB: predicated region body
PF: predicated region fallthrough
CT: control target
= control target key end

     0   :  { %s834_s21 = smov 0   ;;  %s943_s0 = inlined_call_operand.vmem [shape: f32[2,8,32], index: 0, kind: input, shape index: {}]   ;;  %s944_s1 = inlined_call_operand.vmem [shape: f32[1,32], index: 1, kind: input, shape index: {}]   ;;  %s945_s2 = inlined_call_operand.vmem [shape: f32[32,96], index: 2, kind: input, shape index: {}]   ;;  %s946_s3 = inlined_call_operand.vmem [shape: f32[32,32], index: 3, kind: input, shape index: {}]   ;;  %s947_s4 = inlined_call_operand.vmem [shape: f32[4,8,8], index: 4, kind: input, shape index: {}]   ;;  %s948_s5 = inlined_call_operand.vmem [shape: f32[2,8,8], index: 5, kind: input, shape index: {}]   ;;  %s949_s6 = inlined_call_operand.vmem [shape: f32[2,8,32], index: 6, kind: output, shape index: {}]  }
   0x1 LB: > { %s705_s22 = sadd.s32 4294967295, %s782_s21   ;;  %p709_p0 = scmp.ge.s32.totalorder %s782_s21, 1  ;;  %s782_s21 = sphi %s834_s21, %s16_s21  }
   0x2   : > { %p220_p1 = scmp.lt.s32.totalorder %s782_s21, 3 }
   0x4   : > { %p221_p2 = pnand %p709_p0, %p220_p1 }
   0x5   : > { %p252_p3 = scmp.lt.s32.totalorder (!%p221_p2), %s705_s22, 1  ;;  %s785_s13 = smov (!%p221_p2), 80  }
   0x6   : > { %224 = sbr.rel (%p221_p2) target bundleno = 1204 (0x4b4), region = 44  ;;  %s786_s14 = smov (!%p221_p2), 88  }
   0x7   : > { %s787_s15 = smov (!%p221_p2), 96   ;;  %s788_s16 = smov (!%p221_p2), 72  }
   0x8   : > { %s789_s17 = smov (!%p221_p2), 120   ;;  %s790_s18 = smov (!%p221_p2), 104  }
   0x9   : > { %s791_s19 = smov (!%p221_p2), 112   ;;  %s792_s9 = smov (!%p221_p2), 64  }
   0xa   : > { %s793_s10 = smov (!%p221_p2), 40   ;;  %s794_s11 = smov (!%p221_p2), 56  }
   0xb   : > { %s951_s22 = smov (!%p252_p3, %s705_s22), 1  ;;  %vm267_vm0 = vcmask 261120   ;;  %v784_v3 = vmov 32.0   ;;  %v298_v7 = vld [vmem:[%s945_s2 + $0x18] sm:$0xff]  ;;  %v297_v8 = vld [vmem:[%s945_s2 + $0x10] sm:$0xff]  ;;  %v296_v9 = vld [vmem:[%s945_s2 + $0x8] sm:$0xff] }
   0xc   : > { %s842_s23 = sshll.u32 %s951_s22, 3  ;;  %756 = vrcp.f32 %v784_v3  ;;  %314 = vmatpush.msra.mxu0 %v298_v7  ;;  %v295_v11 = vld [vmem:[%s945_s2] sm:$0xff]  ;;  %vm327_vm5 = vcmask 64512   ;;  %v717_v41 = vld [vmem:[%s947_s4 + $0x8] sm:$0xff]  ;;  %v721_v43 = vld [vmem:[%s947_s4 + $0x10] sm:$0xff]  ;;  %s795_s12 = smov 48  }
   0xd   : > { %s255_s26 = scalar_lea.vmem %s943_s0, %s842_s23  ;;  %v755_v23 = vld [vmem:[%s944_s1] ss:$0 sm:$0xff]  ;;  %v725_v45 = vld [vmem:[%s947_s4 + $0x18] sm:$0xff]  ;;  %vm607_vm6 = vcmask 130048   ;;  %vm609_vm7 = vcmask 195584   ;;  %s263_s28 = scalar_lea.vmem %s949_s6, %s842_s23 }
   0xe   : > { %v848_v0 = vld [vmem:[%s255_s26] sm:$0xff]  ;;  %315 = vmatpush.msra.mxu0 %v297_v8  ;;  %s259_s26 = scalar_lea.vmem %s948_s5, %s842_s23 }
   0xf   : > { %v266_v1 = vmul.f32 %v848_v0, %v848_v0  ;;  %v323_v35 = vld [vmem:[%s947_s4] sm:$0xff] }
  0x10   : > { %316 = vmatpush.msra.mxu0 %v296_v9  ;;  %v322_v38 = vld [vmem:[%s259_s26] sm:$0xff] }
  0x11   : > { %v268_v2 = vsel %vm267_vm0, %v266_v1, 0.0 }
  0x12   : > { %269 = vadd.xlane.f32.xlu0 %v268_v2  ;;  %v757_v4 = vpop.eup %756  ;;  %317 = vmatpush.msra.mxu0 %v295_v11 }
  0x13   : > { %v272_v5 = vmul.f32 32.0, %v757_v4  ;;  %vm276_vm1 = vweird.f32 %v757_v4 }
  0x15   : > { %v273_v6 = vsub.f32 1.0, %v272_v5 }
  0x17   : > { %v274_v10 = vmul.f32 %v757_v4, %v273_v6 }
  0x19   : > { %v275_v12 = vadd.f32 %v757_v4, %v274_v10 }
  0x1b   : > { %v277_v13 = vsel %vm276_vm1, %v757_v4, %v275_v12 }
  0x85   : > { %v270_v14 = vpop.xlane.xlu0 %269 }
  0x86   : > { %v278_v15 = vmul.f32 %v277_v13, %v270_v14 }
  0x88   : > { %v279_v16 = vadd.f32 1e-06, %v278_v15 }
  0x8a   : > { %758 = vrsqrt.f32 %v279_v16  ;;  %vm286_vm3 = vweird.f32 %v279_v16 }
  0x90   : > { %v759_v17 = vpop.eup %758 }
  0x91   : > { %v281_v18 = vmul.f32 %v759_v17, %v279_v16  ;;  %vm287_vm2 = vweird.f32 %v759_v17 }
  0x92   : > { %vm288_vm4 = vmor %vm286_vm3, %vm287_vm2 }
  0x93   : > { %v282_v19 = vmul.f32 %v759_v17, %v281_v18 }
  0x95   : > { %v283_v20 = vmul.f32 0.5, %v282_v19 }
  0x97   : > { %v284_v21 = vsub.f32 1.5, %v283_v20 }
  0x99   : > { %v285_v22 = vmul.f32 %v759_v17, %v284_v21 }
  0x9b   : > { %v289_v24 = vsel %vm288_vm4, %v759_v17, %v285_v22 }
  0x9c   : > { %v290_v25 = vmul.f32 %v289_v24, %v848_v0 }
  0x9e   : > { %v294_v26 = vmul.f32 %v755_v23, %v290_v25 }
  0xa0   : > { %713 = vmatmul.msk.f32.vlgmr.msra.gmra.mxu0 %vm267_vm0, %v294_v26 }
 0x11d   : > { %v870_v27 = vpop.f32.mrf.mxu0 }
 0x11e   : > { %462 = vrot.lane.b32.xlu2 %v870_v27, %s785_s13  ;;  %394 = vrot.lane.b32.xlu1 %v870_v27, %s786_s14  ;;  %s796_s13 = smov 8   ;;  %s797_s14 = smov 24  }
 0x11f   : > { %325 = vrot.lane.b32.xlu0 %v870_v27, %s787_s15  ;;  %s798_s15 = smov 16  }
 0x126   : > { %530 = vrot.lane.b32.xlu2 %v870_v27, %s788_s16  ;;  %392 = vrot.lane.b32.xlu1 %v870_v27, %s789_s17 }
 0x12e   : > { %528 = vrot.lane.b32.xlu2 %v870_v27, %s790_s18  ;;  %460 = vrot.lane.b32.xlu1 %v870_v27, %s791_s19 }
 0x178   : > { %v463_v28 = vpop.permute.xlu2 %462 }
 0x180   : > { %v531_v29 = vpop.permute.xlu2 %530 }
 0x181   : > { %726 = vmatpush.xpose.msk.msrb.mxu0 %vm327_vm5, %v531_v29 }
 0x188   : > { %v529_v30 = vpop.permute.xlu2 %528 }
 0x189   : > { %727 = vmatmul.msk.f32.vlgmr.msrb.gmra.mxu0 %vm327_vm5, %v529_v30 }
 0x190   : > { %v395_v31 = vpop.permute.xlu1 %394 }
 0x191   : > { %v326_v32 = vpop.permute.xlu0 %325  ;;  %718 = vmatpush.xpose.msk.msra.mxu3 %vm327_vm5, %v395_v31 }
 0x192   : > { %714 = vmatpush.xpose.msk.msra.mxu1 %vm327_vm5, %v326_v32 }
 0x195   : > { %715 = vmatmul.msk.f32.vlgmr.msra.gmra.mxu1 %vm327_vm5, %v870_v27 }
 0x196   : > { %722 = vmatpush.xpose.msk.msrb.mxu1 %vm327_vm5, %v463_v28 }
 0x198   : > { %v393_v33 = vpop.permute.xlu1 %392 }
 0x199   : > { %719 = vmatmul.msk.f32.vlgmr.msra.gmra.mxu3 %vm327_vm5, %v393_v33  ;;  %v614_v33 = vld [vmem:[%s946_s3 + $0x18] sm:$0xff] }
 0x19a   : > { %630 = vmatpush.msra.mxu1 %v614_v33 }
 0x1a0   : > { %v461_v34 = vpop.permute.xlu1 %460 }
 0x1a1   : > { %723 = vmatmul.msk.f32.vlgmr.msrb.gmra.mxu1 %vm327_vm5, %v461_v34  ;;  %v613_v34 = vld [vmem:[%s946_s3 + $0x10] sm:$0xff] }
 0x1a2   : > { %631 = vmatpush.msra.mxu1 %v613_v34 }
 0x206   : > { %v553_v46 = vpop.f32.mrf.mxu0 }
 0x207   : > { %v554_v50 = vadd.f32 %v725_v45, %v553_v46 }
 0x209   : > { %v556_v54 = vadd.f32 %v554_v50, %v322_v38 }
 0x20b   : > { %v557_v55 = vsel %vm327_vm5, %v556_v54, -inf }
 0x212   : > { %v349_v36 = vpop.f32.mrf.mxu1 }
 0x213   : > { %v350_v37 = vadd.f32 %v349_v36, %v323_v35  ;;  %v612_v35 = vld [vmem:[%s946_s3 + $0x8] sm:$0xff]  ;;  %v611_v36 = vld [vmem:[%s946_s3] sm:$0xff] }
 0x214   : > { %632 = vmatpush.msra.mxu1 %v612_v35 }
 0x215   : > { %v352_v39 = vadd.f32 %v350_v37, %v322_v38 }
 0x216   : > { %633 = vmatpush.msra.mxu1 %v611_v36 }
 0x217   : > { %v353_v40 = vsel %vm327_vm5, %v352_v39, -inf }
 0x218   : > { %354 = vmax.xlane.f32.xlu1 %v353_v40 }
 0x21c   : > { %v417_v42 = vpop.f32.mrf.mxu3 }
 0x21d   : > { %v418_v44 = vadd.f32 %v717_v41, %v417_v42 }
 0x21e   : > { %v485_v47 = vpop.f32.mrf.mxu1 }
 0x21f   : > { %v486_v48 = vadd.f32 %v721_v43, %v485_v47  ;;  %v420_v49 = vadd.f32 %v418_v44, %v322_v38 }
 0x221   : > { %v421_v51 = vsel %vm327_vm5, %v420_v49, -inf  ;;  %v488_v52 = vadd.f32 %v486_v48, %v322_v38 }
 0x222   : > { %422 = vmax.xlane.f32.xlu2 %v421_v51 }
 0x223   : > { %v489_v53 = vsel %vm327_vm5, %v488_v52, -inf }
 0x224   : > { %490 = vmax.xlane.f32.xlu0 %v489_v53 }
 0x22a   : > { %558 = vmax.xlane.f32.xlu2 %v557_v55 }
 0x242   : > { %364 = vrot.lane.b32.xlu2 %v870_v27, %s792_s9 }
 0x24a   : > { %568 = vrot.lane.b32.xlu2 %v870_v27, %s793_s10 }
 0x28b   : > { %v355_v56 = vpop.xlane.xlu1 %354 }
 0x28c   : > { %v356_v57 = vsub.f32 %v352_v39, %v355_v56 }
 0x28e   : > { %v357_v58 = vmul.f32 1.442695, %v356_v57 }
 0x290   : > { %760 = vpow2.f32 %v357_v58 }
 0x295   : > { %v423_v59 = vpop.xlane.xlu2 %422 }
 0x296   : > { %v761_v60 = vpop.eup %760  ;;  %v424_v4 = vsub.f32 %v420_v49, %v423_v59 }
 0x297   : > { %v491_v61 = vpop.xlane.xlu0 %490  ;;  %v359_v62 = vsel %vm327_vm5, %v761_v60, 0.0 }
 0x298   : > { %v492_v63 = vsub.f32 %v488_v52, %v491_v61  ;;  %360 = vadd.xlane.f32.xlu1 %v359_v62  ;;  %v425_v8 = vmul.f32 1.442695, %v424_v4 }
 0x29a   : > { %v493_v1 = vmul.f32 1.442695, %v492_v63 }
 0x29c   : > { %762 = vpow2.f32 %v493_v1 }
 0x29d   : > { %v559_v2 = vpop.xlane.xlu2 %558 }
 0x29e   : > { %v560_v3 = vsub.f32 %v556_v54, %v559_v2 }
 0x2a0   : > { %v561_v5 = vmul.f32 1.442695, %v560_v3 }
 0x2a2   : > { %v763_v6 = vpop.eup %762  ;;  %764 = vpow2.f32 %v561_v5 }
 0x2a3   : > { %v495_v7 = vsel %vm327_vm5, %v763_v6, 0.0  ;;  %766 = vpow2.f32 %v425_v8 }
 0x2a4   : > { %496 = vadd.xlane.f32.xlu1 %v495_v7 }
 0x2a5   : > { %v365_v9 = vpop.permute.xlu2 %364 }
 0x2a6   : > { %385 = vmatpush.msra.mxu2 %v365_v9 }
 0x2a8   : > { %v765_v10 = vpop.eup %764 }
 0x2a9   : > { %v563_v11 = vsel %vm327_vm5, %v765_v10, 0.0  ;;  %v767_v12 = vpop.eup %766 }
 0x2aa   : > { %564 = vadd.xlane.f32.xlu0 %v563_v11  ;;  %v427_v13 = vsel %vm327_vm5, %v767_v12, 0.0 }
 0x2ad   : > { %v569_v23 = vpop.permute.xlu2 %568 }
 0x2b2   : > { %428 = vadd.xlane.f32.xlu0 %v427_v13 }
 0x2bd   : > { %432 = vrot.lane.b32.xlu1 %v870_v27, %s794_s11 }
 0x2c6   : > { %500 = vrot.lane.b32.xlu0 %v870_v27, %s795_s12 }
 0x30b   : > { %v361_v14 = vpop.xlane.xlu1 %360 }
 0x30c   : > { %768 = vrcp.f32 %v361_v14 }
 0x312   : > { %v769_v15 = vpop.eup %768 }
 0x313   : > { %v363_v16 = vmul.f32 %v769_v15, %v761_v60 }
 0x315   : > { %716 = vmatmul.msk.f32.vlgmr.msra.gmra.mxu2 %vm327_vm5, %v363_v16 }
 0x317   : > { %v497_v19 = vpop.xlane.xlu1 %496 }
 0x31d   : > { %v565_v17 = vpop.xlane.xlu0 %564 }
 0x325   : > { %v429_v18 = vpop.xlane.xlu0 %428 }
 0x326   : > { %770 = vrcp.f32 %v429_v18 }
 0x327   : > { %772 = vrcp.f32 %v565_v17 }
 0x328   : > { %774 = vrcp.f32 %v497_v19 }
 0x32c   : > { %v771_v20 = vpop.eup %770 }
 0x32d   : > { %v431_v22 = vmul.f32 %v771_v20, %v767_v12  ;;  %v773_v24 = vpop.eup %772 }
 0x32e   : > { %v775_v25 = vpop.eup %774  ;;  %v567_v26 = vmul.f32 %v773_v24, %v765_v10 }
 0x32f   : > { %v433_v21 = vpop.permute.xlu1 %432  ;;  %v499_v28 = vmul.f32 %v775_v25, %v763_v6 }
 0x330   : > { %453 = vmatpush.msrb.mxu2 %v433_v21 }
 0x331   : > { %720 = vmatmul.msk.f32.vlgmr.msrb.gmra.mxu2 %vm327_vm5, %v431_v22 }
 0x332   : > { %589 = vmatpush.msra.mxu2 %v569_v23 }
 0x338   : > { %v501_v27 = vpop.permute.xlu0 %500 }
 0x339   : > { %521 = vmatpush.msrb.mxu3 %v501_v27  ;;  %728 = vmatmul.msk.f32.vlgmr.msra.gmra.mxu2 %vm327_vm5, %v567_v26 }
 0x33a   : > { %724 = vmatmul.msk.f32.vlgmr.msrb.gmra.mxu3 %vm327_vm5, %v499_v28 }
 0x398   : > { %v387_v29 = vpop.f32.mrf.mxu2 }
 0x3b4   : > { %v455_v30 = vpop.f32.mrf.mxu2 }
 0x3b5   : > { %595 = vrot.lane.b32.xlu2 %v455_v30, %s796_s13 }
 0x3bc   : > { %v591_v31 = vpop.f32.mrf.mxu2 }
 0x3bd   : > { %v523_v32 = vpop.f32.mrf.mxu3  ;;  %603 = vrot.lane.b32.xlu1 %v591_v31, %s797_s14 }
 0x3be   : > { %599 = vrot.lane.b32.xlu0 %v523_v32, %s798_s15 }
 0x40f   : > { %v596_v37 = vpop.permute.xlu2 %595 }
 0x410   : > { %v606_v38 = vsel %vm327_vm5, %v387_v29, %v596_v37 }
 0x42f   : > { %v604_v40 = vpop.permute.xlu1 %603 }
 0x430   : > { %v600_v39 = vpop.permute.xlu0 %599 }
 0x431   : > { %v608_v41 = vsel %vm607_vm6, %v606_v38, %v600_v39 }
 0x432   : > { %v610_v42 = vsel %vm609_vm7, %v608_v41, %v604_v40 }
 0x433   : > { %729 = vmatmul.msk.f32.vlgmr.msra.gmra.mxu1 %vm267_vm0, %v610_v42 }
 0x4b0   : > { %v635_v43 = vpop.f32.mrf.mxu1 }
 0x4b1   : > { %v638_v44 = vadd.f32 %v635_v43, %v848_v0 }
 0x4b3   : > { %639 = vst.msk [vmem:[%s263_s28] sm:$0xff] %vm267_vm0, %v638_v44 }
 0x4b4 PF: > { %s16_s21 = sadd.s32 1, %s782_s21  }
 0x4b5   : > { %p13_p4 = scmp.ge.s32.totalorder %s16_s21, 4  }
 0x4b7   :  { %15 = sbr.rel (!%p13_p4) target bundleno = 1 (0x1), region = 80 }

// kernel: mt5_forward.23
= control target key start
LH: loop header
LB: loop body
LE: loop exit
PB: predicated region body
PF: predicated region fallthrough
CT: control target
= control target key end

     0   :  { %s331_s12 = smov 0   ;;  %s372_s0 = inlined_call_operand.vmem [shape: f32[2,8,32], index: 0, kind: input, shape index: {}]   ;;  %s373_s1 = inlined_call_operand.vmem [shape: f32[1,32], index: 1, kind: input, shape index: {}]   ;;  %s374_s2 = inlined_call_operand.vmem [shape: f32[32,128], index: 2, kind: input, shape index: {}]   ;;  %s375_s3 = inlined_call_operand.vmem [shape: f32[2,8,128], index: 3, kind: output, shape index: {}]  }
   0x1 LB: > { %s278_s13 = sadd.s32 4294967295, %s308_s12   ;;  %p282_p0 = scmp.ge.s32.totalorder %s308_s12, 1  ;;  %s308_s12 = sphi %s331_s12, %s13_s12  }
   0x2   : > { %p136_p1 = scmp.lt.s32.totalorder %s308_s12, 3 }
   0x4   : > { %p137_p2 = pnand %p282_p0, %p136_p1 }
   0x5   : > { %p158_p3 = scmp.lt.s32.totalorder (!%p137_p2), %s278_s13, 1 }
   0x6   : > { %140 = sbr.rel (%p137_p2) target bundleno = 287 (0x11f), region = 32 }
   0xb   : > { %s377_s13 = smov (!%p158_p3, %s278_s13), 1  ;;  %vm169_vm0 = vcmask 261120   ;;  %v310_v3 = vmov 32.0   ;;  %v200_v7 = vld [vmem:[%s374_s2 + $0x18] sm:$0xff]  ;;  %v199_v8 = vld [vmem:[%s374_s2 + $0x10] sm:$0xff]  ;;  %v198_v9 = vld [vmem:[%s374_s2 + $0x8] sm:$0xff] }
   0xc   : > { %s283_s14 = sshll.u32 %s377_s13, 3  ;;  %298 = vrcp.f32 %v310_v3  ;;  %216 = vmatpush.msra.mxu0 %v200_v7  ;;  %v197_v11 = vld [vmem:[%s374_s2] sm:$0xff] }
   0xd   : > { %s161_s17 = scalar_lea.vmem %s372_s0, %s283_s14  ;;  %v297_v23 = vld [vmem:[%s373_s1] ss:$0 sm:$0xff]  ;;  %s165_s30 = scalar_lea.vmem %s375_s3, %s283_s14 }
   0xe   : > { %v166_v0 = vld [vmem:[%s161_s17] sm:$0xff]  ;;  %217 = vmatpush.msra.mxu0 %v199_v8 }
   0xf   : > { %v168_v1 = vmul.f32 %v166_v0, %v166_v0 }
  0x10   : > { %218 = vmatpush.msra.mxu0 %v198_v9 }
  0x11   : > { %v170_v2 = vsel %vm169_vm0, %v168_v1, 0.0 }
  0x12   : > { %171 = vadd.xlane.f32.xlu0 %v170_v2  ;;  %v299_v4 = vpop.eup %298  ;;  %219 = vmatpush.msra.mxu0 %v197_v11 }
  0x13   : > { %v174_v5 = vmul.f32 32.0, %v299_v4  ;;  %vm178_vm1 = vweird.f32 %v299_v4 }
  0x15   : > { %v175_v6 = vsub.f32 1.0, %v174_v5 }
  0x17   : > { %v176_v10 = vmul.f32 %v299_v4, %v175_v6 }
  0x19   : > { %v177_v12 = vadd.f32 %v299_v4, %v176_v10 }
  0x1b   : > { %v179_v13 = vsel %vm178_vm1, %v299_v4, %v177_v12 }
  0x85   : > { %v172_v14 = vpop.xlane.xlu0 %171 }
  0x86   : > { %v180_v15 = vmul.f32 %v179_v13, %v172_v14 }
  0x88   : > { %v181_v16 = vadd.f32 1e-06, %v180_v15 }
  0x8a   : > { %300 = vrsqrt.f32 %v181_v16  ;;  %vm188_vm3 = vweird.f32 %v181_v16 }
  0x90   : > { %v301_v17 = vpop.eup %300 }
  0x91   : > { %v183_v18 = vmul.f32 %v301_v17, %v181_v16  ;;  %vm189_vm2 = vweird.f32 %v301_v17 }
  0x92   : > { %vm190_vm4 = vmor %vm188_vm3, %vm189_vm2 }
  0x93   : > { %v184_v19 = vmul.f32 %v301_v17, %v183_v18 }
  0x95   : > { %v185_v20 = vmul.f32 0.5, %v184_v19 }
  0x97   : > { %v186_v21 = vsub.f32 1.5, %v185_v20 }
  0x99   : > { %v187_v22 = vmul.f32 %v301_v17, %v186_v21 }
  0x9b   : > { %v191_v24 = vsel %vm190_vm4, %v301_v17, %v187_v22 }
  0x9c   : > { %v192_v25 = vmul.f32 %v191_v24, %v166_v0 }
  0x9e   : > { %v196_v26 = vmul.f32 %v297_v23, %v192_v25 }
  0xa0   : > { %285 = vmatmul.msk.f32.vlgmr.msra.gmra.mxu0 %vm169_vm0, %v196_v26 }
 0x11d   : > { %v221_v27 = vpop.f32.mrf.mxu0 }
 0x11e   : > { %224 = vst [vmem:[%s165_s30] sm:$0xff] %v221_v27 }
 0x11f PF: > { %s13_s12 = sadd.s32 1, %s308_s12  }
 0x120   : > { %p10_p4 = scmp.ge.s32.totalorder %s13_s12, 4  }
 0x122   :  { %12 = sbr.rel (!%p10_p4) target bundleno = 1 (0x1), region = 62 }

// kernel: mt5_forward.18
= control target key start
LH: loop header
LB: loop body
LE: loop exit
PB: predicated region body
PF: predicated region fallthrough
CT: control target
= control target key end

     0   :  { %s899_s24 = smov 0   ;;  %s1015_s0 = inlined_call_operand.vmem [shape: f32[2,8,32], index: 0, kind: input, shape index: {}]   ;;  %s1016_s1 = inlined_call_operand.vmem [shape: f32[2,8,32], index: 1, kind: input, shape index: {}]   ;;  %s1017_s2 = inlined_call_operand.vmem [shape: f32[1,32], index: 2, kind: input, shape index: {}]   ;;  %s1018_s3 = inlined_call_operand.vmem [shape: f32[32,32], index: 3, kind: input, shape index: {}]   ;;  %s1019_s4 = inlined_call_operand.vmem [shape: f32[32,64], index: 4, kind: input, shape index: {}]   ;;  %s1020_s5 = inlined_call_operand.vmem [shape: f32[32,32], index: 5, kind: input, shape index: {}]   ;;  %s1021_s6 = inlined_call_operand.vmem [shape: f32[2,1,8], index: 6, kind: input, shape index: {}]   ;;  %s1022_s7 = inlined_call_operand.vmem [shape: f32[2,8,32], index: 7, kind: output, shape index: {}]  }
   0x1 LB: > { %s774_s25 = sadd.s32 4294967295, %s846_s24   ;;  %p778_p0 = scmp.ge.s32.totalorder %s846_s24, 1  ;;  %s846_s24 = sphi %s899_s24, %s17_s24  }
   0x2   : > { %p253_p1 = scmp.lt.s32.totalorder %s846_s24, 3 }
   0x4   : > { %p254_p2 = pnand %p778_p0, %p253_p1 }
   0x5   : > { %p290_p3 = scmp.lt.s32.totalorder (!%p254_p2), %s774_s25, 1  ;;  %s849_s8 = smov (!%p254_p2), 120  }
   0x6   : > { %257 = sbr.rel (%p254_p2) target bundleno = 1474 (0x5c2), region = 48  ;;  %s850_s12 = smov (!%p254_p2), 104  }
   0x7   : > { %s851_s13 = smov (!%p254_p2), 112   ;;  %s853_s14 = smov (!%p254_p2), 96  }
   0x8   : > { %s855_s16 = smov (!%p254_p2), 72   ;;  %s856_s17 = smov (!%p254_p2), 8  }
   0x9   : > { %s857_s18 = smov (!%p254_p2), 16   ;;  %s858_s19 = smov (!%p254_p2), 24  }
   0xb   : > { %s1024_s25 = smov (!%p290_p3, %s774_s25), 1  ;;  %vm309_vm0 = vcmask 261120   ;;  %v848_v3 = vmov 32.0   ;;  %v367_v5 = vld [vmem:[%s1019_s4 + $0x18] sm:$0xff]  ;;  %v366_v6 = vld [vmem:[%s1019_s4 + $0x10] sm:$0xff]  ;;  %v365_v8 = vld [vmem:[%s1019_s4 + $0x8] sm:$0xff] }
   0xc   : > { %s910_s26 = sshll.u32 %s1024_s25, 3  ;;  %820 = vrcp.f32 %v848_v3  ;;  %383 = vmatpush.msra.mxu1 %v367_v5  ;;  %v364_v9 = vld [vmem:[%s1019_s4] sm:$0xff]  ;;  %v340_v12 = vld [vmem:[%s1018_s3 + $0x18] sm:$0xff]  ;;  %v339_v13 = vld [vmem:[%s1018_s3 + $0x10] sm:$0xff]  ;;  %vm395_vm5 = vcmask 64512   ;;  %s300_s11 = scalar_lea.vmem %s1021_s6, %s1024_s25  ;;  %vm667_vm6 = vcmask 130048  }
   0xd   : > { %s293_s29 = scalar_lea.vmem %s1015_s0, %s910_s26  ;;  %s297_s15 = scalar_lea.vmem %s1016_s1, %s910_s26  ;;  %356 = vmatpush.msra.mxu0 %v340_v12  ;;  %v338_v14 = vld [vmem:[%s1018_s3 + $0x8] sm:$0xff]  ;;  %v337_v16 = vld [vmem:[%s1018_s3] sm:$0xff]  ;;  %vm669_vm7 = vcmask 195584  }
   0xe   : > { %v916_v0 = vld [vmem:[%s293_s29] sm:$0xff]  ;;  %384 = vmatpush.msra.mxu1 %v366_v6  ;;  %s852_s25 = smov 88   ;;  %s304_s10 = scalar_lea.vmem %s1022_s7, %s910_s26 }
   0xf   : > { %v308_v1 = vmul.f32 %v916_v0, %v916_v0  ;;  %v306_v11 = vld [vmem:[%s297_s15] sm:$0xff]  ;;  %357 = vmatpush.msra.mxu0 %v339_v13  ;;  %s854_s15 = smov 80  }
  0x10   : > { %385 = vmatpush.msra.mxu1 %v365_v8  ;;  %v818_v28 = vld [vmem:[%s1017_s2] ss:$0 sm:$0xff] }
  0x11   : > { %v310_v2 = vsel %vm309_vm0, %v308_v1, 0.0  ;;  %358 = vmatpush.msra.mxu0 %v338_v14  ;;  %v819_v39 = vld [vmem:[%s300_s11] ss:$0 sm:$0xff] }
  0x12   : > { %311 = vadd.xlane.f32.xlu0 %v310_v2  ;;  %v821_v4 = vpop.eup %820  ;;  %386 = vmatpush.msra.mxu1 %v364_v9 }
  0x13   : > { %v314_v7 = vmul.f32 32.0, %v821_v4  ;;  %783 = vmatmul.msk.f32.vlgmr.msra.gmra.mxu1 %vm309_vm0, %v306_v11  ;;  %359 = vmatpush.msra.mxu0 %v337_v16  ;;  %vm318_vm1 = vweird.f32 %v821_v4 }
  0x15   : > { %v315_v10 = vsub.f32 1.0, %v314_v7 }
  0x17   : > { %v316_v15 = vmul.f32 %v821_v4, %v315_v10 }
  0x19   : > { %v317_v17 = vadd.f32 %v821_v4, %v316_v15 }
  0x1b   : > { %v319_v18 = vsel %vm318_vm1, %v821_v4, %v317_v17 }
  0x85   : > { %v312_v19 = vpop.xlane.xlu0 %311 }
  0x86   : > { %v320_v20 = vmul.f32 %v319_v18, %v312_v19 }
  0x88   : > { %v321_v21 = vadd.f32 1e-06, %v320_v20 }
  0x8a   : > { %822 = vrsqrt.f32 %v321_v21  ;;  %vm328_vm3 = vweird.f32 %v321_v21 }
  0x90   : > { %v823_v22 = vpop.eup %822  ;;  %v955_v32 = vpop.f32.mrf.mxu1 }
  0x91   : > { %v323_v23 = vmul.f32 %v823_v22, %v321_v21  ;;  %vm329_vm2 = vweird.f32 %v823_v22  ;;  %461 = vrot.lane.b32.xlu2 %v955_v32, %s849_s8  ;;  %784 = vmatpush.xpose.msk.msra.mxu2 %vm395_vm5, %v955_v32 }
  0x92   : > { %vm330_vm4 = vmor %vm328_vm3, %vm329_vm2 }
  0x93   : > { %v324_v24 = vmul.f32 %v823_v22, %v323_v23 }
  0x95   : > { %v325_v25 = vmul.f32 0.5, %v324_v24 }
  0x97   : > { %v326_v26 = vsub.f32 1.5, %v325_v25 }
  0x99   : > { %v327_v27 = vmul.f32 %v823_v22, %v326_v26 }
  0x9b   : > { %v331_v29 = vsel %vm330_vm4, %v823_v22, %v327_v27 }
  0x9c   : > { %v332_v30 = vmul.f32 %v331_v29, %v916_v0 }
  0x9e   : > { %v336_v31 = vmul.f32 %v818_v28, %v332_v30  ;;  %v674_v30 = vld [vmem:[%s1020_s5 + $0x18] sm:$0xff] }
  0xa0   : > { %782 = vmatmul.msk.f32.vlgmr.msra.gmra.mxu0 %vm309_vm0, %v336_v31  ;;  %v673_v31 = vld [vmem:[%s1020_s5 + $0x10] sm:$0xff] }
  0xeb   : > { %v462_v34 = vpop.permute.xlu2 %461 }
 0x11d   : > { %v361_v33 = vpop.f32.mrf.mxu0 }
 0x11e   : > { %459 = vrot.lane.b32.xlu2 %v361_v33, %s849_s8  ;;  %785 = vmatmul.msk.f32.vlgmr.msra.gmra.mxu2 %vm395_vm5, %v361_v33 }
 0x126   : > { %589 = vrot.lane.b32.xlu2 %v361_v33, %s850_s12 }
 0x12e   : > { %526 = vrot.lane.b32.xlu2 %v955_v32, %s851_s13 }
 0x136   : > { %524 = vrot.lane.b32.xlu2 %v361_v33, %s851_s13  ;;  %v671_v33 = vld [vmem:[%s1020_s5] sm:$0xff] }
 0x178   : > { %v460_v35 = vpop.permute.xlu2 %459 }
 0x180   : > { %v590_v36 = vpop.permute.xlu2 %589 }
 0x188   : > { %v527_v37 = vpop.permute.xlu2 %526 }
 0x189   : > { %790 = vmatpush.xpose.msk.msrb.mxu0 %vm395_vm5, %v527_v37 }
 0x18d   : > { %690 = vmatpush.msra.mxu0 %v674_v30 }
 0x18f   : > { %691 = vmatpush.msra.mxu0 %v673_v31 }
 0x190   : > { %v525_v38 = vpop.permute.xlu2 %524 }
 0x191   : > { %791 = vmatmul.msk.f32.vlgmr.msrb.gmra.mxu0 %vm395_vm5, %v525_v38 }
 0x1a1   : > { %v419_v40 = vpop.f32.mrf.mxu2 }
 0x1a2   : > { %v420_v41 = vadd.f32 %v819_v39, %v419_v40 }
 0x1a4   : > { %v422_v42 = vsel %vm395_vm5, %v420_v41, -inf }
 0x1a5   : > { %423 = vmax.xlane.f32.xlu0 %v422_v42 }
 0x1b9   : > { %591 = vrot.lane.b32.xlu0 %v955_v32, %s850_s12 }
 0x20e   : > { %v549_v43 = vpop.f32.mrf.mxu0 }
 0x20f   : > { %v550_v44 = vadd.f32 %v819_v39, %v549_v43 }
 0x211   : > { %v552_v45 = vsel %vm395_vm5, %v550_v44, -inf }
 0x212   : > { %553 = vmax.xlane.f32.xlu2 %v552_v45 }
 0x218   : > { %v424_v46 = vpop.xlane.xlu0 %423 }
 0x219   : > { %v425_v47 = vsub.f32 %v420_v41, %v424_v46 }
 0x21b   : > { %v426_v48 = vmul.f32 1.442695, %v425_v47 }
 0x21d   : > { %824 = vpow2.f32 %v426_v48 }
 0x223   : > { %v825_v49 = vpop.eup %824 }
 0x224   : > { %v428_v50 = vsel %vm395_vm5, %v825_v49, 0.0 }
 0x225   : > { %429 = vadd.xlane.f32.xlu1 %v428_v50 }
 0x22a   : > { %498 = vrot.lane.b32.xlu2 %v955_v32, %s852_s25 }
 0x22b   : > { %v592_v57 = vpop.permute.xlu0 %591 }
 0x23e   : > { %433 = vrot.lane.b32.xlu1 %v955_v32, %s853_s14 }
 0x285   : > { %v554_v51 = vpop.xlane.xlu2 %553 }
 0x286   : > { %v555_v59 = vsub.f32 %v550_v44, %v554_v51 }
 0x288   : > { %v556_v60 = vmul.f32 1.442695, %v555_v59 }
 0x28d   : > { %v499_v52 = vpop.permute.xlu2 %498 }
 0x28e   : > { %519 = vmatpush.msrb.mxu2 %v499_v52 }
 0x298   : > { %v430_v53 = vpop.xlane.xlu1 %429 }
 0x299   : > { %826 = vrcp.f32 %v430_v53 }
 0x29a   : > { %828 = vpow2.f32 %v556_v60 }
 0x29f   : > { %v827_v54 = vpop.eup %826 }
 0x2a0   : > { %v432_v56 = vmul.f32 %v827_v54, %v825_v49  ;;  %v829_v1 = vpop.eup %828 }
 0x2a1   : > { %v558_v4 = vsel %vm395_vm5, %v829_v1, 0.0 }
 0x2b0   : > { %v434_v55 = vpop.permute.xlu1 %433 }
 0x2b1   : > { %454 = vmatpush.msra.mxu3 %v434_v55 }
 0x2b2   : > { %786 = vmatmul.msk.f32.vlgmr.msra.gmra.mxu3 %vm395_vm5, %v432_v56 }
 0x2b3   : > { %787 = vmatpush.xpose.msk.msrb.mxu3 %vm395_vm5, %v462_v34 }
 0x2b7   : > { %793 = vmatpush.xpose.msk.msra.mxu3 %vm395_vm5, %v592_v57 }
 0x2ba   : > { %788 = vmatmul.msk.f32.vlgmr.msrb.gmra.mxu3 %vm395_vm5, %v460_v35 }
 0x2c2   : > { %794 = vmatmul.msk.f32.vlgmr.msra.gmra.mxu3 %vm395_vm5, %v590_v36 }
 0x335   : > { %v979_v58 = vpop.f32.mrf.mxu3 }
 0x33d   : > { %v484_v61 = vpop.f32.mrf.mxu3 }
 0x33e   : > { %v485_v62 = vadd.f32 %v819_v39, %v484_v61 }
 0x340   : > { %v487_v63 = vsel %vm395_vm5, %v485_v62, -inf }
 0x341   : > { %488 = vmax.xlane.f32.xlu1 %v487_v63 }
 0x345   : > { %v614_v2 = vpop.f32.mrf.mxu3 }
 0x346   : > { %v615_v3 = vadd.f32 %v819_v39, %v614_v2 }
 0x348   : > { %v617_v5 = vsel %vm395_vm5, %v615_v3, -inf }
 0x349   : > { %559 = vadd.xlane.f32.xlu1 %v558_v4  ;;  %618 = vmax.xlane.f32.xlu0 %v617_v5 }
 0x3b4   : > { %v489_v6 = vpop.xlane.xlu1 %488 }
 0x3b5   : > { %v490_v7 = vsub.f32 %v485_v62, %v489_v6 }
 0x3b7   : > { %v491_v8 = vmul.f32 1.442695, %v490_v7 }
 0x3b9   : > { %830 = vpow2.f32 %v491_v8 }
 0x3bc   : > { %v619_v9 = vpop.xlane.xlu0 %618  ;;  %v560_v16 = vpop.xlane.xlu1 %559 }
 0x3bd   : > { %v620_v10 = vsub.f32 %v615_v3, %v619_v9 }
 0x3bf   : > { %v831_v11 = vpop.eup %830  ;;  %v621_v12 = vmul.f32 1.442695, %v620_v10 }
 0x3c0   : > { %v493_v13 = vsel %vm395_vm5, %v831_v11, 0.0 }
 0x3c1   : > { %832 = vpow2.f32 %v621_v12  ;;  %494 = vadd.xlane.f32.xlu1 %v493_v13 }
 0x3c7   : > { %v833_v14 = vpop.eup %832 }
 0x3c8   : > { %v623_v15 = vsel %vm395_vm5, %v833_v14, 0.0 }
 0x3c9   : > { %624 = vadd.xlane.f32.xlu0 %v623_v15 }
 0x3da   : > { %563 = vrot.lane.b32.xlu1 %v955_v32, %s854_s15 }
 0x3dd   : > { %628 = vrot.lane.b32.xlu0 %v955_v32, %s855_s16  ;;  %v672_v32 = vld [vmem:[%s1020_s5 + $0x8] sm:$0xff] }
 0x3de   : > { %692 = vmatpush.msra.mxu0 %v672_v32 }
 0x3e0   : > { %693 = vmatpush.msra.mxu0 %v671_v33 }
 0x434   : > { %v495_v17 = vpop.xlane.xlu1 %494 }
 0x435   : > { %834 = vrcp.f32 %v495_v17 }
 0x436   : > { %836 = vrcp.f32 %v560_v16 }
 0x43b   : > { %v835_v18 = vpop.eup %834 }
 0x43c   : > { %v497_v19 = vmul.f32 %v835_v18, %v831_v11  ;;  %v625_v20 = vpop.xlane.xlu0 %624  ;;  %v837_v21 = vpop.eup %836 }
 0x43d   : > { %838 = vrcp.f32 %v625_v20  ;;  %v562_v24 = vmul.f32 %v837_v21, %v829_v1 }
 0x43e   : > { %789 = vmatmul.msk.f32.vlgmr.msrb.gmra.mxu2 %vm395_vm5, %v497_v19 }
 0x443   : > { %v839_v22 = vpop.eup %838 }
 0x444   : > { %v627_v25 = vmul.f32 %v839_v22, %v833_v14 }
 0x44c   : > { %v564_v23 = vpop.permute.xlu1 %563 }
 0x44d   : > { %584 = vmatpush.msrb.mxu1 %v564_v23 }
 0x44e   : > { %792 = vmatmul.msk.f32.vlgmr.msrb.gmra.mxu1 %vm395_vm5, %v562_v24 }
 0x44f   : > { %v629_v26 = vpop.permute.xlu0 %628 }
 0x450   : > { %649 = vmatpush.msra.mxu2 %v629_v26 }
 0x451   : > { %795 = vmatmul.msk.f32.vlgmr.msra.gmra.mxu2 %vm395_vm5, %v627_v25 }
 0x4c1   : > { %v521_v27 = vpop.f32.mrf.mxu2 }
 0x4c2   : > { %655 = vrot.lane.b32.xlu2 %v521_v27, %s856_s17 }
 0x4cb   : > { %v586_v28 = vpop.f32.mrf.mxu1 }
 0x4cc   : > { %659 = vrot.lane.b32.xlu0 %v586_v28, %s857_s18 }
 0x4d4   : > { %v651_v29 = vpop.f32.mrf.mxu2 }
 0x4d5   : > { %663 = vrot.lane.b32.xlu2 %v651_v29, %s858_s19 }
 0x51c   : > { %v656_v34 = vpop.permute.xlu2 %655 }
 0x51d   : > { %v666_v35 = vsel %vm395_vm5, %v979_v58, %v656_v34 }
 0x52f   : > { %v664_v37 = vpop.permute.xlu2 %663 }
 0x53e   : > { %v660_v36 = vpop.permute.xlu0 %659 }
 0x53f   : > { %v668_v38 = vsel %vm667_vm6, %v666_v35, %v660_v36 }
 0x540   : > { %v670_v39 = vsel %vm669_vm7, %v668_v38, %v664_v37 }
 0x541   : > { %796 = vmatmul.msk.f32.vlgmr.msra.gmra.mxu0 %vm309_vm0, %v670_v39 }
 0x5be   : > { %v695_v40 = vpop.f32.mrf.mxu0 }
 0x5bf   : > { %v698_v41 = vadd.f32 %v695_v40, %v916_v0 }
 0x5c1   : > { %699 = vst.msk [vmem:[%s304_s10] sm:$0xff] %vm309_vm0, %v698_v41 }
 0x5c2 PF: > { %s17_s24 = sadd.s32 1, %s846_s24  }
 0x5c3   : > { %p14_p4 = scmp.ge.s32.totalorder %s17_s24, 4  }
 0x5c5   :  { %16 = sbr.rel (!%p14_p4) target bundleno = 1 (0x1), region = 84 }

</bundles_post_ra>
